<compile_context>
chip_gen: v6e
topology: v6e:2x2x1
jax: 0.10.0
libtpu: 0.0.40
codegen_flags: <defaults>
</compile_context>

<pallas_src>
import jax
import jax.numpy as jnp
import numpy as np
from jax.experimental import pallas as pl
from jax.experimental.pallas import tpu as pltpu

K = 3        # kernel_size
GROUP = 1    # group
STRIDE = 1   # stride


def _involution_kernel(xb_ref, xt_ref, xbt_ref,
                       wpre_ref, bpre_ref, wker_ref, bker_ref,
                       mid_s_ref, mid_b_ref, wpost_ref, bpost_ref,
                       out_ref, y_ref):
    TH, W, Cin = xb_ref.shape
    Cout = wpre_ref.shape[1]
    f32 = jnp.float32
    bf16 = jnp.bfloat16

    hi = pl.program_id(1)
    nbands = pl.num_programs(1)

    wpre = wpre_ref[...]          # bf16 (Cin, Cout), BN folded
    bpre = bpre_ref[...]          # f32  (1, Cout)

    # ---- pre_conv (1x1, BN folded) + relu, written into the y VMEM scratch ---
    # Interior band rows -> y_ref[1:TH+1].  bf16 MXU operands, f32 accumulation.
    yb = jnp.dot(xb_ref[...].astype(bf16).reshape(TH * W, Cin), wpre,
                 preferred_element_type=f32) + bpre
    yb = jnp.maximum(yb, 0.0)                                  # (TH*W, Cout) f32
    y_ref[1:TH + 1] = yb.reshape(TH, W, Cout)

    # ---- kernel-generation branch: pooling(1,1)=id, (reduce @ span) folded ---
    ker = jnp.dot(yb.astype(bf16), wker_ref[...],
                  preferred_element_type=f32) + bker_ref[...]
    ker = ker.reshape(TH, W, K * K)                            # (TH, W, 9)

    # ---- halo rows: clamped single-row fetches; rows outside the image are ---
    # zeroed (== the zero H-padding of y) by a scalar mask fused with the relu.
    # (NB: a non-finite value in a clamped row would give 0*inf=NaN; inputs are
    #  finite here, matching the original module's assumptions.)
    top_ok = (hi > 0).astype(f32)
    bot_ok = (hi + 1 < nbands).astype(f32)
    yt = jnp.dot(xt_ref[...].astype(bf16).reshape(W, Cin), wpre,
                 preferred_element_type=f32) + bpre
    y_ref[0:1] = (jnp.maximum(yt, 0.0) * top_ok).reshape(1, W, Cout)
    ybt = jnp.dot(xbt_ref[...].astype(bf16).reshape(W, Cin), wpre,
                  preferred_element_type=f32) + bpre
    y_ref[TH + 1:TH + 2] = (jnp.maximum(ybt, 0.0) * bot_ok).reshape(1, W, Cout)

    # ---- involution: kh taps via leading-axis slices, kw taps via W rolls ----
    wcol = jax.lax.broadcasted_iota(jnp.int32, (W, 1), 0)
    left_ok = (wcol >= 1).astype(f32)        # kw=0 tap is zero padding at w == 0
    right_ok = (wcol <= W - 2).astype(f32)   # kw=2 tap is zero padding at w == W-1

    y = y_ref[...]                                             # (TH+2, W, Cout)
    y_l = pltpu.roll(y, shift=1, axis=1) * left_ok        # col w -> y[.., w-1, :]
    y_r = pltpu.roll(y, shift=W - 1, axis=1) * right_ok   # col w -> y[.., w+1, :]

    # Center tap (kh=1, kw=1, ker index 4) initializes acc (no zero-fill pass).
    acc = y[1:TH + 1] * ker[:, :, 4:5]
    for kh in range(K):
        kb = kh * K
        acc = acc + y_l[kh:kh + TH] * ker[:, :, kb:kb + 1]
        if kh != 1:
            acc = acc + y[kh:kh + TH] * ker[:, :, kb + 1:kb + 2]
        acc = acc + y_r[kh:kh + TH] * ker[:, :, kb + 2:kb + 3]

    # ---- mid_norm (eval BN) + relu (f32 VPU) ---------------------------------
    z = jnp.maximum(acc.reshape(TH * W, Cout) * mid_s_ref[...] + mid_b_ref[...],
                    0.0)

    # ---- post_conv (1x1, BN folded) + residual (Identity downsample) ---------
    o = jnp.dot(z.astype(bf16), wpost_ref[...],
                preferred_element_type=f32) + bpost_ref[...]
    o = o + xb_ref[...].astype(f32).reshape(TH * W, Cin)       # late x re-read

    out_ref[...] = o.reshape(TH, W, Cout).astype(out_ref.dtype)


def _vmem_limit_bytes():
    """Generation-aware VMEM budget (v5e/v6e: 128 MiB, v7x: 64 MiB per TC)."""
    cap = 64 * 1024 * 1024                       # conservative default (v7x)
    try:
        info = pltpu.get_tpu_info()
        cap_attr = getattr(info, "vmem_capacity_bytes", None)
        if cap_attr:
            cap = int(cap_attr)
    except Exception:
        pass
    return min(cap // 2, 64 * 1024 * 1024)


def _pick_band_rows(H, W, cin, cout, budget_bytes, min_bands=1):
    """Largest divisor of H whose per-band live set fits the VMEM budget.

    The estimate includes the double-buffered x/out blocks + halo rows, the
    (TH+2,W,Cout) y scratch, band-sized temporaries (y/y_l/y_r, acc, z, ker)
    and the resident (bf16) weights.
    """
    kk = K * K

    def est(th):
        io_blocks = 4 * (2 * th * W * (cin + cout) + 4 * W * cin)
        scratch = 4 * (th + 2) * W * cout
        live = 4 * (3 * (th + 2) * W * cout + th * W * (3 * cout + kk))
        weights = 2 * 2 * (cin * cout + cout * kk + cout * cout) \
            + 4 * (6 * cout + 2 * kk)
        return io_blocks + scratch + live + weights

    th_cap = max(H // max(min_bands, 1), 1)
    th = th_cap
    while th > 1 and (H % th != 0 or est(th) > budget_bytes):
        th -= 1
    return th


def involution_forward(x_nchw, params, band_rows=None):
    """x_nchw: (B, Cin, H, W) float32 -> (B, Cout, H, W) float32."""
    B, Cin, H, W = x_nchw.shape
    Cout = params["wpre"].shape[1]
    assert Cin == Cout, "stride=1 residual add requires in_channel == out_channel"

    f32 = jnp.float32
    bf16 = jnp.bfloat16
    KK = K * K

    # ---- fold eval-mode BN and reduce@span into the conv weights (wrapper) ---
    # Matmul weights are pre-cast to bf16 (MXU operands); biases/BN stay f32.
    wpre = (params["wpre"] * params["pre_s"]).astype(bf16)
    bpre = (params["bpre"] * params["pre_s"] + params["pre_b"]).astype(f32)
    wker = jnp.dot(params["wred"], params["wspan"]).astype(bf16)
    bker = (jnp.dot(params["bred"], params["wspan"]) + params["bspan"]).astype(f32)
    wpost = (params["wpost"] * params["post_s"]).astype(bf16)
    bpost = (params["bpost"] * params["post_s"] + params["post_b"]).astype(f32)
    folded = [wpre, bpre, wker, bker,
              params["mid_s"].astype(f32), params["mid_b"].astype(f32),
              wpost, bpost]

    # ---- spatial row-band grid (generation-aware sizing) ----------------------
    vmem_limit = _vmem_limit_bytes()
    if band_rows is None:
        band_rows = _pick_band_rows(H, W, Cin, Cout,
                                    budget_bytes=vmem_limit // 3,
                                    min_bands=2 if B < 2 else 1)
    assert H % band_rows == 0, "band_rows must divide H"
    TH = band_rows
    nb = H // TH

    x_nhwc = jnp.transpose(x_nchw, (0, 2, 3, 1))              # NCHW -> NHWC
    # TODO(synk): if this layer chains with other NHWC-friendly layers, keep
    #             activations NHWC across layers to drop these two transposes.

    def band_map(b, i):
        return (b, i, 0, 0)

    def top_map(b, i):                                        # row i*TH - 1, clamped
        return (b, jnp.maximum(i * TH - 1, 0), 0, 0)

    def bot_map(b, i):                                        # row i*TH + TH, clamped
        return (b, jnp.minimum(i * TH + TH, H - 1), 0, 0)

    def const_map(b, i):
        return (0, 0)

    in_specs = [
        pl.BlockSpec((None, TH, W, Cin), band_map),   # interior rows of the band
        pl.BlockSpec((None, 1, W, Cin), top_map),     # top halo row (clamped)
        pl.BlockSpec((None, 1, W, Cin), bot_map),     # bottom halo row (clamped)
    ] + [pl.BlockSpec(p.shape, const_map) for p in folded]    # resident weights

    out_spec = pl.BlockSpec((None, TH, W, Cout), band_map)

    # ---- advisory cost estimate for XLA's scheduler ---------------------------
    matmul_flops = (2 * B * (H + 2 * nb) * W * Cin * Cout        # pre_conv (+halos)
                    + 2 * B * H * W * Cout * KK                  # reduce@span folded
                    + 2 * B * H * W * Cout * Cout)               # post_conv
    tap_flops = 2 * B * H * W * KK * Cout
    elem_flops = 8 * B * H * W * Cout
    flops = int(matmul_flops + tap_flops + elem_flops)
    bytes_accessed = int(4 * B * (H + 2 * nb) * W * Cin          # x band + halo reads
                         + 4 * B * H * W * Cout                  # out write
                         + B * nb * (2 * (Cin * Cout + Cout * KK + Cout * Cout)
                                     + 4 * (6 * Cout + 2 * KK)))

    out_nhwc = pl.pallas_call(
        _involution_kernel,
        out_shape=jax.ShapeDtypeStruct((B, H, W, Cout), x_nchw.dtype),
        grid=(B, nb),
        in_specs=in_specs,
        out_specs=out_spec,
        scratch_shapes=[pltpu.VMEM((TH + 2, W, Cout), jnp.float32)],
        compiler_params=pltpu.CompilerParams(
            dimension_semantics=("parallel", "parallel"),
            vmem_limit_bytes=int(vmem_limit)),
        cost_estimate=pl.CostEstimate(flops=flops, transcendentals=0,
                                      bytes_accessed=bytes_accessed),
    )(x_nhwc, x_nhwc, x_nhwc, *folded)

    return jnp.transpose(out_nhwc, (0, 3, 1, 2))              # NHWC -> NCHW


def make_params(cin, cout, reduce_rate=2, seed=0):
    """Deterministic synthetic parameters; BN layers given as eval (scale, bias)."""
    f32 = jnp.float32
    cmid = cout // reduce_rate
    kk = K * K * GROUP
    ks = jax.random.split(jax.random.PRNGKey(seed), 8)

    def bn_fold(c, salt, eps=1e-5):
        i = jnp.arange(c, dtype=f32)
        gamma = 1.0 + 0.05 * jnp.cos(i + salt)
        beta = 0.02 * jnp.sin(i + 2.0 * salt)
        mean = 0.01 * (i - c / 2.0)
        var = 1.0 + 0.1 * (i % 3)
        scale = gamma / jnp.sqrt(var + eps)
        bias = beta - mean * scale
        return scale.reshape(1, c).astype(f32), bias.reshape(1, c).astype(f32)

    pre_s, pre_b = bn_fold(cout, 0.3)
    mid_s, mid_b = bn_fold(cout, 1.7)
    post_s, post_b = bn_fold(cout, 2.9)

    return {
        "wpre":  (0.30 * jax.random.normal(ks[0], (cin, cout))).astype(f32),
        "bpre":  (0.10 * jax.random.normal(ks[1], (1, cout))).astype(f32),
        "pre_s": pre_s, "pre_b": pre_b,
        "wred":  (0.30 * jax.random.normal(ks[2], (cout, cmid))).astype(f32),
        "bred":  (0.10 * jax.random.normal(ks[3], (1, cmid))).astype(f32),
        "wspan": (0.30 * jax.random.normal(ks[4], (cmid, kk))).astype(f32),
        "bspan": (0.10 * jax.random.normal(ks[5], (1, kk))).astype(f32),
        "mid_s": mid_s, "mid_b": mid_b,
        "wpost": (0.30 * jax.random.normal(ks[6], (cout, cout))).astype(f32),
        "bpost": (0.10 * jax.random.normal(ks[7], (1, cout))).astype(f32),
        "post_s": post_s, "post_b": post_b,
    }


def reference_forward(x_nchw, params):
    """Pure-JAX (non-Pallas) f32 reference mirroring the PyTorch forward (eval)."""
    x = jnp.transpose(x_nchw, (0, 2, 3, 1)).astype(jnp.float32)   # (B,H,W,Cin)
    B, H, W, _ = x.shape
    y = jnp.einsum("bhwc,cd->bhwd", x, params["wpre"]) + params["bpre"][0]
    y = jnp.maximum(y * params["pre_s"][0] + params["pre_b"][0], 0.0)
    r = jnp.einsum("bhwc,cd->bhwd", y, params["wred"]) + params["bred"][0]
    ker = jnp.einsum("bhwc,cd->bhwd", r, params["wspan"]) + params["bspan"][0]
    ypad = jnp.pad(y, ((0, 0), (1, 1), (1, 1), (0, 0)))
    acc = jnp.zeros_like(y)
    for kh in range(K):
        for kw in range(K):
            kidx = kh * K + kw
            acc = acc + ypad[:, kh:kh + H, kw:kw + W, :] * ker[:, :, :, kidx:kidx + 1]
    z = jnp.maximum(acc * params["mid_s"][0] + params["mid_b"][0], 0.0)
    o = jnp.einsum("bhwc,cd->bhwd", z, params["wpost"]) + params["bpost"][0]
    o = o * params["post_s"][0] + params["post_b"][0]
    o = o + x
    return jnp.transpose(o, (0, 3, 1, 2))


if __name__ == "__main__":
    B, C, H, W = 2, 8, 16, 16           # in_channel == out_channel == 8
    key = jax.random.PRNGKey(0)
    x = jax.random.normal(key, (B, C, H, W), dtype=jnp.float32)

    params = make_params(cin=C, cout=C, reduce_rate=2, seed=0)

    out = involution_forward(x, params, band_rows=8)   # 2 row bands per image
    out = jax.block_until_ready(out)

    ref = jax.block_until_ready(reference_forward(x, params))
    assert out.shape == (B, C, H, W)
    # bf16 MXU operands (f32 accumulation) vs. the pure-f32 reference.
    np.testing.assert_allclose(np.asarray(out), np.asarray(ref), rtol=3e-2, atol=3e-2)

    print("KERNEL_OK")
</pallas_src>

<mosaic_0001>
module attributes {stable_mosaic.version = 11 : i64} {
  func.func @_involution_kernel(%arg0: i32, %arg1: i32, %arg2: memref<1x8x16x8xf32, #tpu.memory_space<vmem>>, %arg3: memref<1x1x16x8xf32, #tpu.memory_space<vmem>>, %arg4: memref<1x1x16x8xf32, #tpu.memory_space<vmem>>, %arg5: memref<8x8xbf16, #tpu.memory_space<vmem>>, %arg6: memref<1x8xf32, #tpu.memory_space<vmem>>, %arg7: memref<8x9xbf16, #tpu.memory_space<vmem>>, %arg8: memref<1x9xf32, #tpu.memory_space<vmem>>, %arg9: memref<1x8xf32, #tpu.memory_space<vmem>>, %arg10: memref<1x8xf32, #tpu.memory_space<vmem>>, %arg11: memref<8x8xbf16, #tpu.memory_space<vmem>>, %arg12: memref<1x8xf32, #tpu.memory_space<vmem>>, %arg13: memref<1x8x16x8xf32, #tpu.memory_space<vmem>>, %arg14: memref<10x16x8xf32, #tpu.memory_space<vmem>>) attributes {dimension_semantics = [#tpu.dimension_semantics<parallel>, #tpu.dimension_semantics<parallel>], iteration_bounds = array<i64: 2, 2>, scalar_prefetch = 0 : i64, scratch_operands = 1 : i64, tpu.core_type = #tpu.core_type<tc>, window_params = [{transform_indices = @transform_0, window_bounds = array<i64: 1, 8, 16, 8>}, {transform_indices = @transform_1, window_bounds = array<i64: 1, 1, 16, 8>}, {transform_indices = @transform_2, window_bounds = array<i64: 1, 1, 16, 8>}, {pipeline_mode = #tpu.pipeline_mode<synchronous>, transform_indices = @transform_3, window_bounds = array<i64: 8, 8>}, {pipeline_mode = #tpu.pipeline_mode<synchronous>, transform_indices = @transform_4, window_bounds = array<i64: 1, 8>}, {pipeline_mode = #tpu.pipeline_mode<synchronous>, transform_indices = @transform_5, window_bounds = array<i64: 8, 9>}, {pipeline_mode = #tpu.pipeline_mode<synchronous>, transform_indices = @transform_6, window_bounds = array<i64: 1, 9>}, {pipeline_mode = #tpu.pipeline_mode<synchronous>, transform_indices = @transform_7, window_bounds = array<i64: 1, 8>}, {pipeline_mode = #tpu.pipeline_mode<synchronous>, transform_indices = @transform_8, window_bounds = array<i64: 1, 8>}, {pipeline_mode = #tpu.pipeline_mode<synchronous>, transform_indices = @transform_9, window_bounds = array<i64: 8, 8>}, {pipeline_mode = #tpu.pipeline_mode<synchronous>, transform_indices = @transform_10, window_bounds = array<i64: 1, 8>}, {transform_indices = @transform_11, window_bounds = array<i64: 1, 8, 16, 8>}]} {
    %c0 = arith.constant 0 : index
    %c0_0 = arith.constant 0 : index
    %0 = vector.load %arg5[%c0, %c0_0] : memref<8x8xbf16, #tpu.memory_space<vmem>>, vector<8x8xbf16>
    %c0_1 = arith.constant 0 : index
    %c0_2 = arith.constant 0 : index
    %1 = vector.load %arg6[%c0_1, %c0_2] : memref<1x8xf32, #tpu.memory_space<vmem>>, vector<1x8xf32>
    %c0_3 = arith.constant 0 : index
    %c0_4 = arith.constant 0 : index
    %c0_5 = arith.constant 0 : index
    %c0_6 = arith.constant 0 : index
    %2 = vector.load %arg2[%c0_3, %c0_4, %c0_5, %c0_6] : memref<1x8x16x8xf32, #tpu.memory_space<vmem>>, vector<1x8x16x8xf32>
    %3 = vector.shape_cast %2 : vector<1x8x16x8xf32> to vector<8x16x8xf32>
    %4 = arith.truncf %3 : vector<8x16x8xf32> to vector<8x16x8xbf16>
    %5 = vector.shape_cast %4 : vector<8x16x8xbf16> to vector<128x8xbf16>
    %cst = arith.constant dense<0.000000e+00> : vector<128x8xf32>
    %6 = tpu.matmul %5, %0, %cst {dimension_numbers = #tpu.dot_dimension_numbers<[1], [0], [0], [1], [0, 0, 1, 1], [], []>} : vector<128x8xbf16>, vector<8x8xbf16>, vector<128x8xf32> -> vector<128x8xf32>
    %7 = vector.broadcast %1 : vector<1x8xf32> to vector<128x8xf32>
    %8 = arith.addf %6, %7 : vector<128x8xf32>
    %cst_7 = arith.constant 0.000000e+00 : f32
    %9 = vector.broadcast %cst_7 : f32 to vector<128x8xf32>
    %10 = arith.maximumf %8, %9 : vector<128x8xf32>
    %11 = vector.shape_cast %10 : vector<128x8xf32> to vector<8x16x8xf32>
    %c1 = arith.constant 1 : index
    %c0_8 = arith.constant 0 : index
    %c0_9 = arith.constant 0 : index
    %12 = vector.load %arg14[%c1, %c0_8, %c0_9] : memref<10x16x8xf32, #tpu.memory_space<vmem>>, vector<8x16x8xf32>
    tpu.vector_store %arg14[%c1, %c0_8, %c0_9], %11 {strides = array<i32>} : memref<10x16x8xf32, #tpu.memory_space<vmem>>, vector<8x16x8xf32>,
    %13 = arith.truncf %10 : vector<128x8xf32> to vector<128x8xbf16>
    %c0_10 = arith.constant 0 : index
    %c0_11 = arith.constant 0 : index
    %14 = vector.load %arg7[%c0_10, %c0_11] : memref<8x9xbf16, #tpu.memory_space<vmem>>, vector<8x9xbf16>
    %cst_12 = arith.constant dense<0.000000e+00> : vector<128x9xf32>
    %15 = tpu.matmul %13, %14, %cst_12 {dimension_numbers = #tpu.dot_dimension_numbers<[1], [0], [0], [1], [0, 0, 1, 1], [], []>} : vector<128x8xbf16>, vector<8x9xbf16>, vector<128x9xf32> -> vector<128x9xf32>
    %c0_13 = arith.constant 0 : index
    %c0_14 = arith.constant 0 : index
    %16 = vector.load %arg8[%c0_13, %c0_14] : memref<1x9xf32, #tpu.memory_space<vmem>>, vector<1x9xf32>
    %17 = vector.broadcast %16 : vector<1x9xf32> to vector<128x9xf32>
    %18 = arith.addf %15, %17 : vector<128x9xf32>
    %19 = vector.shape_cast %18 : vector<128x9xf32> to vector<8x16x9xf32>
    %c0_i32 = arith.constant 0 : i32
    %20 = arith.cmpi sgt, %arg1, %c0_i32 : i32
    %21 = arith.extui %20 : i1 to i32
    %22 = arith.sitofp %21 : i32 to f32
    %c1_i32 = arith.constant 1 : i32
    %23 = arith.addi %arg1, %c1_i32 : i32
    %c2_i32 = arith.constant 2 : i32
    %24 = arith.cmpi slt, %23, %c2_i32 : i32
    %25 = arith.extui %24 : i1 to i32
    %26 = arith.sitofp %25 : i32 to f32
    %c0_15 = arith.constant 0 : index
    %c0_16 = arith.constant 0 : index
    %c0_17 = arith.constant 0 : index
    %c0_18 = arith.constant 0 : index
    %27 = vector.load %arg3[%c0_15, %c0_16, %c0_17, %c0_18] : memref<1x1x16x8xf32, #tpu.memory_space<vmem>>, vector<1x1x16x8xf32>
    %28 = vector.shape_cast %27 : vector<1x1x16x8xf32> to vector<1x16x8xf32>
    %29 = arith.truncf %28 : vector<1x16x8xf32> to vector<1x16x8xbf16>
    %30 = vector.shape_cast %29 : vector<1x16x8xbf16> to vector<16x8xbf16>
    %cst_19 = arith.constant dense<0.000000e+00> : vector<16x8xf32>
    %31 = tpu.matmul %30, %0, %cst_19 {dimension_numbers = #tpu.dot_dimension_numbers<[1], [0], [0], [1], [0, 0, 1, 1], [], []>} : vector<16x8xbf16>, vector<8x8xbf16>, vector<16x8xf32> -> vector<16x8xf32>
    %32 = vector.broadcast %1 : vector<1x8xf32> to vector<16x8xf32>
    %33 = arith.addf %31, %32 : vector<16x8xf32>
    %cst_20 = arith.constant 0.000000e+00 : f32
    %34 = vector.broadcast %cst_20 : f32 to vector<16x8xf32>
    %35 = arith.maximumf %33, %34 : vector<16x8xf32>
    %36 = vector.broadcast %22 : f32 to vector<16x8xf32>
    %37 = arith.mulf %35, %36 : vector<16x8xf32>
    %38 = vector.shape_cast %37 : vector<16x8xf32> to vector<1x16x8xf32>
    %c0_21 = arith.constant 0 : index
    %c0_22 = arith.constant 0 : index
    %c0_23 = arith.constant 0 : index
    %39 = vector.load %arg14[%c0_21, %c0_22, %c0_23] : memref<10x16x8xf32, #tpu.memory_space<vmem>>, vector<1x16x8xf32>
    tpu.vector_store %arg14[%c0_21, %c0_22, %c0_23], %38 {strides = array<i32>} : memref<10x16x8xf32, #tpu.memory_space<vmem>>, vector<1x16x8xf32>,
    %c0_24 = arith.constant 0 : index
    %c0_25 = arith.constant 0 : index
    %c0_26 = arith.constant 0 : index
    %c0_27 = arith.constant 0 : index
    %40 = vector.load %arg4[%c0_24, %c0_25, %c0_26, %c0_27] : memref<1x1x16x8xf32, #tpu.memory_space<vmem>>, vector<1x1x16x8xf32>
    %41 = vector.shape_cast %40 : vector<1x1x16x8xf32> to vector<1x16x8xf32>
    %42 = arith.truncf %41 : vector<1x16x8xf32> to vector<1x16x8xbf16>
    %43 = vector.shape_cast %42 : vector<1x16x8xbf16> to vector<16x8xbf16>
    %cst_28 = arith.constant dense<0.000000e+00> : vector<16x8xf32>
    %44 = tpu.matmul %43, %0, %cst_28 {dimension_numbers = #tpu.dot_dimension_numbers<[1], [0], [0], [1], [0, 0, 1, 1], [], []>} : vector<16x8xbf16>, vector<8x8xbf16>, vector<16x8xf32> -> vector<16x8xf32>
    %45 = vector.broadcast %1 : vector<1x8xf32> to vector<16x8xf32>
    %46 = arith.addf %44, %45 : vector<16x8xf32>
    %cst_29 = arith.constant 0.000000e+00 : f32
    %47 = vector.broadcast %cst_29 : f32 to vector<16x8xf32>
    %48 = arith.maximumf %46, %47 : vector<16x8xf32>
    %49 = vector.broadcast %26 : f32 to vector<16x8xf32>
    %50 = arith.mulf %48, %49 : vector<16x8xf32>
    %51 = vector.shape_cast %50 : vector<16x8xf32> to vector<1x16x8xf32>
    %c9 = arith.constant 9 : index
    %c0_30 = arith.constant 0 : index
    %c0_31 = arith.constant 0 : index
    %52 = vector.load %arg14[%c9, %c0_30, %c0_31] : memref<10x16x8xf32, #tpu.memory_space<vmem>>, vector<1x16x8xf32>
    tpu.vector_store %arg14[%c9, %c0_30, %c0_31], %51 {strides = array<i32>} : memref<10x16x8xf32, #tpu.memory_space<vmem>>, vector<1x16x8xf32>,
    %53 = tpu.iota {dimensions = array<i32: 0>} : vector<16x1xi32>
    %c1_i32_32 = arith.constant 1 : i32
    %54 = vector.broadcast %c1_i32_32 : i32 to vector<16x1xi32>
    %55 = arith.cmpi sge, %53, %54 : vector<16x1xi32>
    %56 = arith.extui %55 : vector<16x1xi1> to vector<16x1xi32>
    %57 = arith.sitofp %56 : vector<16x1xi32> to vector<16x1xf32>
    %c14_i32 = arith.constant 14 : i32
    %58 = vector.broadcast %c14_i32 : i32 to vector<16x1xi32>
    %59 = arith.cmpi sle, %53, %58 : vector<16x1xi32>
    %60 = arith.extui %59 : vector<16x1xi1> to vector<16x1xi32>
    %61 = arith.sitofp %60 : vector<16x1xi32> to vector<16x1xf32>
    %c0_33 = arith.constant 0 : index
    %c0_34 = arith.constant 0 : index
    %c0_35 = arith.constant 0 : index
    %62 = vector.load %arg14[%c0_33, %c0_34, %c0_35] : memref<10x16x8xf32, #tpu.memory_space<vmem>>, vector<10x16x8xf32>
    %c1_i32_36 = arith.constant 1 : i32
    %63 = tpu.dynamic_rotate %62 by %c1_i32_36 dim 1 : vector<10x16x8xf32>, i32 -> vector<10x16x8xf32>
    %64 = vector.shape_cast %57 : vector<16x1xf32> to vector<1x16x1xf32>
    %65 = vector.broadcast %64 : vector<1x16x1xf32> to vector<10x16x8xf32>
    %66 = arith.mulf %63, %65 : vector<10x16x8xf32>
    %c15_i32 = arith.constant 15 : i32
    %67 = tpu.dynamic_rotate %62 by %c15_i32 dim 1 : vector<10x16x8xf32>, i32 -> vector<10x16x8xf32>
    %68 = vector.shape_cast %61 : vector<16x1xf32> to vector<1x16x1xf32>
    %69 = vector.broadcast %68 : vector<1x16x1xf32> to vector<10x16x8xf32>
    %70 = arith.mulf %67, %69 : vector<10x16x8xf32>
    %71 = vector.extract_strided_slice %62 {offsets = [1, 0, 0], sizes = [8, 16, 8], strides = [1, 1, 1]} : vector<10x16x8xf32> to vector<8x16x8xf32>
    %72 = vector.extract_strided_slice %19 {offsets = [0, 0, 4], sizes = [8, 16, 1], strides = [1, 1, 1]} : vector<8x16x9xf32> to vector<8x16x1xf32>
    %73 = vector.broadcast %72 : vector<8x16x1xf32> to vector<8x16x8xf32>
    %74 = arith.mulf %71, %73 : vector<8x16x8xf32>
    %75 = vector.extract_strided_slice %66 {offsets = [0, 0, 0], sizes = [8, 16, 8], strides = [1, 1, 1]} : vector<10x16x8xf32> to vector<8x16x8xf32>
    %76 = vector.extract_strided_slice %19 {offsets = [0, 0, 0], sizes = [8, 16, 1], strides = [1, 1, 1]} : vector<8x16x9xf32> to vector<8x16x1xf32>
    %77 = vector.broadcast %76 : vector<8x16x1xf32> to vector<8x16x8xf32>
    %78 = arith.mulf %75, %77 : vector<8x16x8xf32>
    %79 = arith.addf %74, %78 : vector<8x16x8xf32>
    %80 = vector.extract_strided_slice %62 {offsets = [0, 0, 0], sizes = [8, 16, 8], strides = [1, 1, 1]} : vector<10x16x8xf32> to vector<8x16x8xf32>
    %81 = vector.extract_strided_slice %19 {offsets = [0, 0, 1], sizes = [8, 16, 1], strides = [1, 1, 1]} : vector<8x16x9xf32> to vector<8x16x1xf32>
    %82 = vector.broadcast %81 : vector<8x16x1xf32> to vector<8x16x8xf32>
    %83 = arith.mulf %80, %82 : vector<8x16x8xf32>
    %84 = arith.addf %79, %83 : vector<8x16x8xf32>
    %85 = vector.extract_strided_slice %70 {offsets = [0, 0, 0], sizes = [8, 16, 8], strides = [1, 1, 1]} : vector<10x16x8xf32> to vector<8x16x8xf32>
    %86 = vector.extract_strided_slice %19 {offsets = [0, 0, 2], sizes = [8, 16, 1], strides = [1, 1, 1]} : vector<8x16x9xf32> to vector<8x16x1xf32>
    %87 = vector.broadcast %86 : vector<8x16x1xf32> to vector<8x16x8xf32>
    %88 = arith.mulf %85, %87 : vector<8x16x8xf32>
    %89 = arith.addf %84, %88 : vector<8x16x8xf32>
    %90 = vector.extract_strided_slice %66 {offsets = [1, 0, 0], sizes = [8, 16, 8], strides = [1, 1, 1]} : vector<10x16x8xf32> to vector<8x16x8xf32>
    %91 = vector.extract_strided_slice %19 {offsets = [0, 0, 3], sizes = [8, 16, 1], strides = [1, 1, 1]} : vector<8x16x9xf32> to vector<8x16x1xf32>
    %92 = vector.broadcast %91 : vector<8x16x1xf32> to vector<8x16x8xf32>
    %93 = arith.mulf %90, %92 : vector<8x16x8xf32>
    %94 = arith.addf %89, %93 : vector<8x16x8xf32>
    %95 = vector.extract_strided_slice %70 {offsets = [1, 0, 0], sizes = [8, 16, 8], strides = [1, 1, 1]} : vector<10x16x8xf32> to vector<8x16x8xf32>
    %96 = vector.extract_strided_slice %19 {offsets = [0, 0, 5], sizes = [8, 16, 1], strides = [1, 1, 1]} : vector<8x16x9xf32> to vector<8x16x1xf32>
    %97 = vector.broadcast %96 : vector<8x16x1xf32> to vector<8x16x8xf32>
    %98 = arith.mulf %95, %97 : vector<8x16x8xf32>
    %99 = arith.addf %94, %98 : vector<8x16x8xf32>
    %100 = vector.extract_strided_slice %66 {offsets = [2, 0, 0], sizes = [8, 16, 8], strides = [1, 1, 1]} : vector<10x16x8xf32> to vector<8x16x8xf32>
    %101 = vector.extract_strided_slice %19 {offsets = [0, 0, 6], sizes = [8, 16, 1], strides = [1, 1, 1]} : vector<8x16x9xf32> to vector<8x16x1xf32>
    %102 = vector.broadcast %101 : vector<8x16x1xf32> to vector<8x16x8xf32>
    %103 = arith.mulf %100, %102 : vector<8x16x8xf32>
    %104 = arith.addf %99, %103 : vector<8x16x8xf32>
    %105 = vector.extract_strided_slice %62 {offsets = [2, 0, 0], sizes = [8, 16, 8], strides = [1, 1, 1]} : vector<10x16x8xf32> to vector<8x16x8xf32>
    %106 = vector.extract_strided_slice %19 {offsets = [0, 0, 7], sizes = [8, 16, 1], strides = [1, 1, 1]} : vector<8x16x9xf32> to vector<8x16x1xf32>
    %107 = vector.broadcast %106 : vector<8x16x1xf32> to vector<8x16x8xf32>
    %108 = arith.mulf %105, %107 : vector<8x16x8xf32>
    %109 = arith.addf %104, %108 : vector<8x16x8xf32>
    %110 = vector.extract_strided_slice %70 {offsets = [2, 0, 0], sizes = [8, 16, 8], strides = [1, 1, 1]} : vector<10x16x8xf32> to vector<8x16x8xf32>
    %111 = vector.extract_strided_slice %19 {offsets = [0, 0, 8], sizes = [8, 16, 1], strides = [1, 1, 1]} : vector<8x16x9xf32> to vector<8x16x1xf32>
    %112 = vector.broadcast %111 : vector<8x16x1xf32> to vector<8x16x8xf32>
    %113 = arith.mulf %110, %112 : vector<8x16x8xf32>
    %114 = arith.addf %109, %113 : vector<8x16x8xf32>
    %115 = vector.shape_cast %114 : vector<8x16x8xf32> to vector<128x8xf32>
    %c0_37 = arith.constant 0 : index
    %c0_38 = arith.constant 0 : index
    %116 = vector.load %arg9[%c0_37, %c0_38] : memref<1x8xf32, #tpu.memory_space<vmem>>, vector<1x8xf32>
    %117 = vector.broadcast %116 : vector<1x8xf32> to vector<128x8xf32>
    %118 = arith.mulf %115, %117 : vector<128x8xf32>
    %c0_39 = arith.constant 0 : index
    %c0_40 = arith.constant 0 : index
    %119 = vector.load %arg10[%c0_39, %c0_40] : memref<1x8xf32, #tpu.memory_space<vmem>>, vector<1x8xf32>
    %120 = vector.broadcast %119 : vector<1x8xf32> to vector<128x8xf32>
    %121 = arith.addf %118, %120 : vector<128x8xf32>
    %cst_41 = arith.constant 0.000000e+00 : f32
    %122 = vector.broadcast %cst_41 : f32 to vector<128x8xf32>
    %123 = arith.maximumf %121, %122 : vector<128x8xf32>
    %124 = arith.truncf %123 : vector<128x8xf32> to vector<128x8xbf16>
    %c0_42 = arith.constant 0 : index
    %c0_43 = arith.constant 0 : index
    %125 = vector.load %arg11[%c0_42, %c0_43] : memref<8x8xbf16, #tpu.memory_space<vmem>>, vector<8x8xbf16>
    %cst_44 = arith.constant dense<0.000000e+00> : vector<128x8xf32>
    %126 = tpu.matmul %124, %125, %cst_44 {dimension_numbers = #tpu.dot_dimension_numbers<[1], [0], [0], [1], [0, 0, 1, 1], [], []>} : vector<128x8xbf16>, vector<8x8xbf16>, vector<128x8xf32> -> vector<128x8xf32>
    %c0_45 = arith.constant 0 : index
    %c0_46 = arith.constant 0 : index
    %127 = vector.load %arg12[%c0_45, %c0_46] : memref<1x8xf32, #tpu.memory_space<vmem>>, vector<1x8xf32>
    %128 = vector.broadcast %127 : vector<1x8xf32> to vector<128x8xf32>
    %129 = arith.addf %126, %128 : vector<128x8xf32>
    %c0_47 = arith.constant 0 : index
    %c0_48 = arith.constant 0 : index
    %c0_49 = arith.constant 0 : index
    %c0_50 = arith.constant 0 : index
    %130 = vector.load %arg2[%c0_47, %c0_48, %c0_49, %c0_50] : memref<1x8x16x8xf32, #tpu.memory_space<vmem>>, vector<1x8x16x8xf32>
    %131 = vector.shape_cast %130 : vector<1x8x16x8xf32> to vector<8x16x8xf32>
    %132 = vector.shape_cast %131 : vector<8x16x8xf32> to vector<128x8xf32>
    %133 = arith.addf %129, %132 : vector<128x8xf32>
    %134 = vector.shape_cast %133 : vector<128x8xf32> to vector<8x16x8xf32>
    %c0_51 = arith.constant 0 : index
    %c0_52 = arith.constant 0 : index
    %c0_53 = arith.constant 0 : index
    %c0_54 = arith.constant 0 : index
    %135 = vector.load %arg13[%c0_51, %c0_52, %c0_53, %c0_54] : memref<1x8x16x8xf32, #tpu.memory_space<vmem>>, vector<1x8x16x8xf32>
    %136 = vector.shape_cast %135 : vector<1x8x16x8xf32> to vector<8x16x8xf32>
    %137 = vector.shape_cast %134 : vector<8x16x8xf32> to vector<1x8x16x8xf32>
    tpu.vector_store %arg13[%c0_51, %c0_52, %c0_53, %c0_54], %137 {strides = array<i32>} : memref<1x8x16x8xf32, #tpu.memory_space<vmem>>, vector<1x8x16x8xf32>,
    return
  }
  func.func @transform_0(%arg0: i32, %arg1: i32) -> (i32, i32, i32, i32) {
    %c0_i32 = arith.constant 0 : i32
    %c0_i32_0 = arith.constant 0 : i32
    %c0_i32_1 = arith.constant 0 : i32
    return %arg0, %arg1, %c0_i32, %c0_i32_0 : i32, i32, i32, i32
  }
  func.func @transform_1(%arg0: i32, %arg1: i32) -> (i32, i32, i32, i32) {
    %c8_i32 = arith.constant 8 : i32
    %0 = arith.muli %arg1, %c8_i32 : i32
    %c1_i32 = arith.constant 1 : i32
    %1 = arith.subi %0, %c1_i32 : i32
    %c0_i32 = arith.constant 0 : i32
    %2 = arith.maxsi %1, %c0_i32 : i32
    %c0_i32_0 = arith.constant 0 : i32
    %c0_i32_1 = arith.constant 0 : i32
    %c0_i32_2 = arith.constant 0 : i32
    return %arg0, %2, %c0_i32_0, %c0_i32_1 : i32, i32, i32, i32
  }
  func.func @transform_2(%arg0: i32, %arg1: i32) -> (i32, i32, i32, i32) {
    %c8_i32 = arith.constant 8 : i32
    %0 = arith.muli %arg1, %c8_i32 : i32
    %c8_i32_0 = arith.constant 8 : i32
    %1 = arith.addi %0, %c8_i32_0 : i32
    %c15_i32 = arith.constant 15 : i32
    %2 = arith.minsi %1, %c15_i32 : i32
    %c0_i32 = arith.constant 0 : i32
    %c0_i32_1 = arith.constant 0 : i32
    %c0_i32_2 = arith.constant 0 : i32
    return %arg0, %2, %c0_i32, %c0_i32_1 : i32, i32, i32, i32
  }
  func.func @transform_3(%arg0: i32, %arg1: i32) -> (i32, i32) {
    %c0_i32 = arith.constant 0 : i32
    %c0_i32_0 = arith.constant 0 : i32
    %c0_i32_1 = arith.constant 0 : i32
    return %c0_i32, %c0_i32_0 : i32, i32
  }
  func.func @transform_4(%arg0: i32, %arg1: i32) -> (i32, i32) {
    %c0_i32 = arith.constant 0 : i32
    %c0_i32_0 = arith.constant 0 : i32
    %c0_i32_1 = arith.constant 0 : i32
    return %c0_i32, %c0_i32_0 : i32, i32
  }
  func.func @transform_5(%arg0: i32, %arg1: i32) -> (i32, i32) {
    %c0_i32 = arith.constant 0 : i32
    %c0_i32_0 = arith.constant 0 : i32
    %c0_i32_1 = arith.constant 0 : i32
    return %c0_i32, %c0_i32_0 : i32, i32
  }
  func.func @transform_6(%arg0: i32, %arg1: i32) -> (i32, i32) {
    %c0_i32 = arith.constant 0 : i32
    %c0_i32_0 = arith.constant 0 : i32
    %c0_i32_1 = arith.constant 0 : i32
    return %c0_i32, %c0_i32_0 : i32, i32
  }
  func.func @transform_7(%arg0: i32, %arg1: i32) -> (i32, i32) {
    %c0_i32 = arith.constant 0 : i32
    %c0_i32_0 = arith.constant 0 : i32
    %c0_i32_1 = arith.constant 0 : i32
    return %c0_i32, %c0_i32_0 : i32, i32
  }
  func.func @transform_8(%arg0: i32, %arg1: i32) -> (i32, i32) {
    %c0_i32 = arith.constant 0 : i32
    %c0_i32_0 = arith.constant 0 : i32
    %c0_i32_1 = arith.constant 0 : i32
    return %c0_i32, %c0_i32_0 : i32, i32
  }
  func.func @transform_9(%arg0: i32, %arg1: i32) -> (i32, i32) {
    %c0_i32 = arith.constant 0 : i32
    %c0_i32_0 = arith.constant 0 : i32
    %c0_i32_1 = arith.constant 0 : i32
    return %c0_i32, %c0_i32_0 : i32, i32
  }
  func.func @transform_10(%arg0: i32, %arg1: i32) -> (i32, i32) {
    %c0_i32 = arith.constant 0 : i32
    %c0_i32_0 = arith.constant 0 : i32
    %c0_i32_1 = arith.constant 0 : i32
    return %c0_i32, %c0_i32_0 : i32, i32
  }
  func.func @transform_11(%arg0: i32, %arg1: i32) -> (i32, i32, i32, i32) {
    %c0_i32 = arith.constant 0 : i32
    %c0_i32_0 = arith.constant 0 : i32
    %c0_i32_1 = arith.constant 0 : i32
    return %arg0, %arg1, %c0_i32, %c0_i32_0 : i32, i32, i32, i32
  }
}

</mosaic_0001>

<bundles_post_ra>
// kernel: tpu_custom_call.1
= control target key start
LH: loop header
LB: loop body
LE: loop exit
PB: predicated region body
PF: predicated region fallthrough
CT: control target
= control target key end

     0   :  { %s2889_s17 = smov 0   ;;  %s2891_s18 = smov 0   ;;  %s4289_s0 = inlined_call_operand.vmem [shape: f32[2,16,16,8], index: 0, kind: input, shape index: {}]   ;;  %s4290_s1 = inlined_call_operand.vmem [shape: f32[2,16,16,8], index: 1, kind: input, shape index: {}]   ;;  %s4291_s2 = inlined_call_operand.vmem [shape: f32[2,16,16,8], index: 2, kind: input, shape index: {}]   ;;  %s4292_s3 = inlined_call_operand.vmem [shape: bf16[8,8], index: 3, kind: input, shape index: {}]   ;;  %s4293_s4 = inlined_call_operand.vmem [shape: f32[1,8], index: 4, kind: input, shape index: {}]   ;;  %s4294_s5 = inlined_call_operand.vmem [shape: bf16[8,9], index: 5, kind: input, shape index: {}]   ;;  %s4295_s6 = inlined_call_operand.vmem [shape: f32[1,9], index: 6, kind: input, shape index: {}]   ;;  %s4296_s7 = inlined_call_operand.vmem [shape: f32[1,8], index: 7, kind: input, shape index: {}]   ;;  %s4297_s8 = inlined_call_operand.vmem [shape: f32[1,8], index: 8, kind: input, shape index: {}]   ;;  %s4298_s9 = inlined_call_operand.vmem [shape: bf16[8,8], index: 9, kind: input, shape index: {}]   ;;  %s4299_s10 = inlined_call_operand.vmem [shape: f32[1,8], index: 10, kind: input, shape index: {}]   ;;  %s4300_s11 = inlined_call_operand.vmem [shape: f32[2,16,16,8], index: 11, kind: output, shape index: {}]  }
   0x1   :  { %s2893_s19 = smov 0   ;;  %s2895_s20 = smov 0  }
   0x2   :  { %s2897_s21 = smov 0  }
   0x3 LB: > { %s30_s22 = sadd.s32 1, %s2808_s19  ;;  %s33_s23 = sadd.s32 1, %s2812_s20  ;;  %s2816_s21 = sphi %s2897_s21, %s21_s21   ;;  %s2812_s20 = sphi %s2895_s20, %s4565_s20   ;;  %s2808_s19 = sphi %s2893_s19, %s4564_s19   ;;  %s2804_s18 = sphi %s2891_s18, %s4563_s18   ;;  %s2800_s17 = sphi %s2889_s17, %s4562_s17  }
   0x4   : > { %p31_p0 = scmp.ge.s32.totalorder %s30_s22, 2  ;;  %p2425_p1 = scmp.ge.s32.totalorder %s2816_s21, 1 }
   0x5   : > { %p423_p2 = scmp.lt.s32.totalorder %s2816_s21, 5 }
   0x6   : > { %s4567_s22 = smov (%p31_p0, %s30_s22), 0  ;;  %s4569_s23 = smov (!%p31_p0, %s33_s23), %s2812_s20 }
   0x7   : > { %p424_p3 = pnand %p2425_p1, %p423_p2  ;;  %p35_p4 = scmp.ge.s32.totalorder %s4569_s23, 2 }
   0x9   : > { %s4571_s23 = smov (%p35_p4, %s4569_s23), 0  ;;  %427 = sbr.rel (%p424_p3) target bundleno = 1180 (0x49c), region = 64 }
   0xe   : > { %v556_v0 = vld [vmem:[%s4292_s3] sm:$0xf]  ;;  %vm613_vm0 = vcmask 1043456   ;;  %s2925_s26 = sshll.u32 %s2800_s17, 3  ;;  %p500_p5 = scmp.lt.s32.totalorder %s2804_s18, 1  ;;  %vm588_vm1 = vcmask 64512  }
   0xf   : > { %2587 = vmatprep.subr.msk.bf16.mxu0 %vm613_vm0, %v556_v0  ;;  %v2929_v1 = vsel %vm613_vm0, %v556_v0, 0  ;;  %p502_p6 = scmp.lt.s32.totalorder %s2925_s26, 15  ;;  %2588 = vmatprep.subr.msk.bf16.mxu1 %vm613_vm0, %v556_v0  ;;  %v755_v2 = vld [vmem:[%s4294_s5] sm:$0xf]  ;;  %v4306_v28 = vmov 0.0   ;;  %vm2819_vm2 = vmmov 0  }
  0x10   : > { %2520 = vmatpush3.bf16.msra.mxu0 %v2929_v1  ;;  %s4573_s18 = smov (!%p500_p5, %s2804_s18), 1  ;;  %2586 = vmatpush3.bf16.msra.mxu1 %v2929_v1  ;;  %v788_v23 = vsel %vm613_vm0, %v755_v2, 0  ;;  %v2992_v32 = vld [vmem:[%s4293_s4] ss:$0 sm:$0xff]  ;;  %p887_p9 = scmp.gt.s32.totalorder %s2800_s17, 0 }
  0x11   : > { %s503_s29 = scalar_select %p502_p6, %s2925_s26, 15  ;;  %2589 = vmatprep.subr.msk.bf16.mxu1 %vm613_vm0, %v755_v2  ;;  %2555 = vmatprep.subr.bf16.mxu0 %v4306_v28 }
  0x12   : > { %s2940_s30 = sshll.u32 %s4573_s18, 5  ;;  %s2431_s18 = sadd.s32 4294967295, %s2925_s26 }
  0x13   : > { %s2427_s12 = sshll.u32 %s503_s29, 1  ;;  %p512_p7 = scmp.gt.s32.totalorder %s2431_s18, 0 }
  0x14   : > { %s2943_s13 = sadd.s32 %s2940_s30, %s2427_s12  ;;  %p2432_p8 = scmp.lt.s32.totalorder %s2431_s18, 15 }
  0x15   : > { %s4301_s14 = sshll.u32 %s2943_s13, 3  ;;  %s4575_s18 = smov (!%p512_p7, %s2431_s18), 0 }
  0x16   : > { %s2951_s24 = scalar_lea.vmem %s4289_s0, %s4301_s14  ;;  %s4577_s18 = smov (!%p2432_p8, %s4575_s18), 15 }
  0x17   : > { %v558_v3 = vld [vmem:[%s2951_s24] sm:$0xff]  ;;  %v559_v4 = vld [vmem:[%s2951_s24 + $0x8] sm:$0xff]  ;;  %v560_v5 = vld [vmem:[%s2951_s24 + $0x10] sm:$0xff]  ;;  %s2437_s25 = sshll.u32 %s4577_s18, 1 }
  0x18   : > { %v574_v6 = vpack.c.bf16 %v559_v4, %v558_v3  ;;  %v561_v7 = vld [vmem:[%s2951_s24 + $0x18] sm:$0xff]  ;;  %v562_v8 = vld [vmem:[%s2951_s24 + $0x20] sm:$0xff]  ;;  %v563_v9 = vld [vmem:[%s2951_s24 + $0x28] sm:$0xff]  ;;  %s520_s27 = sadd.s32 %s2437_s25, %s2940_s30 }
  0x19   : > { %v575_v10 = vpack.c.bf16 %v561_v7, %v560_v5  ;;  %v576_v11 = vpack.c.bf16 %v563_v9, %v562_v8  ;;  %v566_v12 = vld [vmem:[%s2951_s24 + $0x40] sm:$0xff]  ;;  %v567_v13 = vld [vmem:[%s2951_s24 + $0x48] sm:$0xff]  ;;  %v568_v14 = vld [vmem:[%s2951_s24 + $0x50] sm:$0xff]  ;;  %s2439_s28 = sshll.u32 %s520_s27, 3 }
  0x1a   : > { %2521 = vmatprep.mubr.msk.bf16.mxu0 %vm588_vm1, %v574_v6  ;;  %v569_v15 = vld [vmem:[%s2951_s24 + $0x58] sm:$0xff]  ;;  %v578_v16 = vpack.c.bf16 %v567_v13, %v566_v12  ;;  %v570_v18 = vld [vmem:[%s2951_s24 + $0x60] sm:$0xff]  ;;  %v571_v19 = vld [vmem:[%s2951_s24 + $0x68] sm:$0xff]  ;;  %s522_s15 = scalar_lea.vmem %s4290_s1, %s2439_s28  ;;  %s528_s28 = sadd.s32 8, %s2925_s26 }
  0x1b   : > { %2522 = vmatmul.mubr.msk.bf16.vlgmr.msra.gmra.mxu0 %vm588_vm1, %v575_v10  ;;  %v579_v17 = vpack.c.bf16 %v569_v15, %v568_v14  ;;  %v564_v20 = vld [vmem:[%s2951_s24 + $0x30] sm:$0xff]  ;;  %v565_v21 = vld [vmem:[%s2951_s24 + $0x38] sm:$0xff]  ;;  %v580_v22 = vpack.c.bf16 %v571_v19, %v570_v18  ;;  %v894_v29 = vld [vmem:[%s522_s15] sm:$0xff]  ;;  %s888_s14 = scalar_select %p887_p9, 1, 0 }
  0x1c   : > { %2525 = vmatprep.mubr.msk.bf16.mxu0 %vm588_vm1, %v576_v11  ;;  %2529 = vmatprep.mubr.msk.bf16.mxu1 %vm588_vm1, %v578_v16  ;;  %v577_v24 = vpack.c.bf16 %v565_v21, %v564_v20  ;;  %v572_v25 = vld [vmem:[%s2951_s24 + $0x70] sm:$0xff]  ;;  %v573_v26 = vld [vmem:[%s2951_s24 + $0x78] sm:$0xff]  ;;  %v895_v30 = vld [vmem:[%s522_s15 + $0x8] sm:$0xff]  ;;  %p529_p10 = scmp.lt.s32.totalorder %s528_s28, 15 }
  0x1d   : > { %2530 = vmatmul.mubr.msk.bf16.vlgmr.msra.gmra.mxu1 %vm588_vm1, %v579_v17  ;;  %v581_v27 = vpack.c.bf16 %v573_v26, %v572_v25  ;;  %2556 = vmatpush3.bf16.msra.mxu0 %v2929_v1  ;;  %v896_v31 = vpack.c.bf16 %v895_v30, %v894_v29  ;;  %v4302_v25 = vmov 8   ;;  %v4312_v26 = vmov 4   ;;  %s889_s18 = scvt.s32.f32 %s888_s14 }
  0x1e   : > { %2533 = vmatprep.mubr.msk.bf16.mxu1 %vm588_vm1, %v580_v22  ;;  %2538 = vmatpush3.bf16.msra.mxu1 %v788_v23  ;;  %s4579_s28 = smov (!%p529_p10, %s528_s28), 15 }
  0x1f   : > { %2561 = vmatprep.subr.bf16.mxu1 %v4306_v28  ;;  %2650 = vset.pattern.permute.xlu0 %v4302_v25  ;;  %s4581_s28 = smov (!%p529_p10, %s4579_s28), 15 }
  0x20   : > { %2642 = vset.pattern.permute.xlu1 %v4312_v26  ;;  %s2444_s29 = sshll.u32 %s4581_s28, 1 }
  0x21   : > { %s537_s12 = sadd.s32 %s2444_s29, %s2940_s30  ;;  %s890_s30 = sadd.s32 1, %s2800_s17 }
  0x22   : > { %s2446_s26 = sshll.u32 %s537_s12, 3  ;;  %p891_p11 = scmp.lt.s32.totalorder %s890_s30, 2 }
  0x23   : > { %2526 = vmatmul.mubr.msk.bf16.gmra.mxu0 %vm588_vm1, %v577_v24  ;;  %s539_s14 = scalar_lea.vmem %s4291_s2, %s2446_s26 }
  0x24   : > { %2557 = vmatprep.mubr.msk.bf16.mxu0 %vm2819_vm2, %v4306_v28 }
  0x25   : > { %2534 = vmatmul.mubr.msk.bf16.gmra.mxu1 %vm588_vm1, %v581_v27 }
  0x2b   : > { %2558 = vmatmul.mubr.msk.bf16.vlgmr.msra.gmra.mxu0 %vm588_vm1, %v896_v31 }
  0xdb   : > { %v2523_v33 = vpop.f32.mrf.mxu0 }
  0xdc   : > { %v660_v34 = vadd.f32 %v2523_v33, %v2992_v32 }
  0xdd   : > { %v651_v35 = vpop.f32.mrf.mxu0  ;;  %v2531_v38 = vpop.f32.mrf.mxu1 }
  0xde   : > { %v716_v36 = vmax.f32 %v660_v34, 0.0  ;;  %v652_v37 = vadd.f32 %v2992_v32, %v651_v35  ;;  %v2997_v40 = vadd.f32 %v2531_v38, %v2992_v32  ;;  %v943_v35 = vstv %s889_s18  ;;  %s892_s18 = scalar_select %p891_p11, 1, 0 }
  0xdf   : > { %v2524_v39 = vpop.f32.mrf.mxu0  ;;  %v683_v43 = vpop.f32.mrf.mxu1 }
  0xe0   : > { %733 = vst.msk [vmem:[#allocation2 + $0x20] sm:$0xff] %vm588_vm1, %v716_v36  ;;  %v714_v41 = vmax.f32 %v652_v37, 0.0  ;;  %v663_v42 = vadd.f32 %v2524_v39, %v2992_v32  ;;  %v724_v45 = vmax.f32 %v2997_v40, 0.0  ;;  %v684_v46 = vadd.f32 %v2992_v32, %v683_v43  ;;  %v3050_v40 = vld [vmem:[%s4295_s6] ss:$0 sm:$0xff]  ;;  %s893_s25 = scvt.s32.f32 %s892_s18 }
  0xe1   : > { %v654_v44 = vpop.f32.mrf.mxu0  ;;  %v2532_v49 = vpop.f32.mrf.mxu1 }
  0xe2   : > { %731 = vst.msk [vmem:[#allocation2 + $0x10] sm:$0xff] %vm588_vm1, %v714_v41  ;;  %v717_v47 = vmax.f32 %v663_v42, 0.0  ;;  %v655_v48 = vadd.f32 %v2992_v32, %v654_v44  ;;  %741 = vst.msk [vmem:[#allocation2 + $0x60] sm:$0xff] %vm588_vm1, %v724_v45  ;;  %v722_v51 = vmax.f32 %v684_v46, 0.0  ;;  %v695_v52 = vadd.f32 %v2532_v49, %v2992_v32 }
  0xe3   : > { %v2527_v50 = vpop.f32.mrf.mxu0  ;;  %v686_v55 = vpop.f32.mrf.mxu1  ;;  %v4314_v46 = vmov 1  }
  0xe4   : > { %734 = vst.msk [vmem:[#allocation2 + $0x28] sm:$0xff] %vm588_vm1, %v717_v47  ;;  %v715_v53 = vmax.f32 %v655_v48, 0.0  ;;  %v676_v54 = vadd.f32 %v2527_v50, %v2992_v32  ;;  %739 = vst.msk [vmem:[#allocation2 + $0x50] sm:$0xff] %vm588_vm1, %v722_v51  ;;  %v725_v57 = vmax.f32 %v695_v52, 0.0  ;;  %v687_v58 = vadd.f32 %v2992_v32, %v686_v55  ;;  %v949_v48 = vld [vmem:[%s539_s14 + $0x8] sm:$0xff] }
  0xe5   : > { %v667_v56 = vpop.f32.mrf.mxu0  ;;  %v2535_v62 = vpop.f32.mrf.mxu1  ;;  %v748_v63 = vpack.c.bf16 %v717_v47, %v716_v36  ;;  %v948_v47 = vld [vmem:[%s539_s14] sm:$0xff]  ;;  %v4318_v50 = vmov 2   ;;  %v4316_v52 = vmov 3   ;;  %s4561_s14 = sshll.u32 %s2943_s13, 3 }
  0xe6   : > { %732 = vst.msk [vmem:[#allocation2 + $0x18] sm:$0xff] %vm588_vm1, %v715_v53  ;;  %v747_v59 = vpack.c.bf16 %v715_v53, %v714_v41  ;;  %v720_v60 = vmax.f32 %v676_v54, 0.0  ;;  %v668_v61 = vadd.f32 %v2992_v32, %v667_v56  ;;  %742 = vst.msk [vmem:[#allocation2 + $0x68] sm:$0xff] %vm588_vm1, %v725_v57  ;;  %v723_v2 = vmax.f32 %v687_v58, 0.0 }
  0xe7   : > { %v2528_v0 = vpop.f32.mrf.mxu0  ;;  %v708_v3 = vadd.f32 %v2535_v62, %v2992_v32  ;;  %v699_v6 = vpop.f32.mrf.mxu1  ;;  %v752_v22 = vpack.c.bf16 %v725_v57, %v724_v45  ;;  %v4320_v45 = vmov 0   ;;  %v950_v49 = vpack.c.bf16 %v949_v48, %v948_v47 }
  0xe8   : > { %2539 = vmatprep.mubr.msk.bf16.mxu1 %vm588_vm1, %v747_v59  ;;  %737 = vst.msk [vmem:[#allocation2 + $0x40] sm:$0xff] %vm588_vm1, %v720_v60  ;;  %v718_v4 = vmax.f32 %v668_v61, 0.0  ;;  %v679_v5 = vadd.f32 %v2528_v0, %v2992_v32  ;;  %740 = vst.msk [vmem:[#allocation2 + $0x58] sm:$0xff] %vm588_vm1, %v723_v2  ;;  %v700_v9 = vadd.f32 %v2992_v32, %v699_v6  ;;  %v4304_v53 = vmov 7  }
  0xe9   : > { %2540 = vmatmul.mubr.msk.bf16.vlgmr.msra.gmra.mxu1 %vm588_vm1, %v748_v63  ;;  %v670_v7 = vpop.f32.mrf.mxu0  ;;  %v728_v8 = vmax.f32 %v708_v3, 0.0  ;;  %v2536_v12 = vpop.f32.mrf.mxu1  ;;  %v751_v21 = vpack.c.bf16 %v723_v2, %v722_v51  ;;  %v4308_v51 = vmov 5   ;;  %v4310_v56 = vmov 6  }
  0xea   : > { %735 = vst.msk [vmem:[#allocation2 + $0x30] sm:$0xff] %vm588_vm1, %v718_v4  ;;  %v721_v10 = vmax.f32 %v679_v5, 0.0  ;;  %v671_v11 = vadd.f32 %v2992_v32, %v670_v7  ;;  %2562 = vmatpush3.bf16.msra.mxu1 %v2929_v1  ;;  %v726_v13 = vmax.f32 %v700_v9, 0.0  ;;  %v711_v14 = vadd.f32 %v2536_v12, %v2992_v32 }
  0xeb   : > { %745 = vst.msk [vmem:[#allocation2 + $0x80] sm:$0xff] %vm588_vm1, %v728_v8  ;;  %v702_v16 = vpop.f32.mrf.mxu1  ;;  %v934_v27 = vpop.f32.mrf.mxu0 }
  0xec   : > { %738 = vst.msk [vmem:[#allocation2 + $0x48] sm:$0xff] %vm588_vm1, %v721_v10  ;;  %v719_v15 = vmax.f32 %v671_v11, 0.0  ;;  %v750_v17 = vpack.c.bf16 %v721_v10, %v720_v60  ;;  %743 = vst.msk [vmem:[#allocation2 + $0x70] sm:$0xff] %vm588_vm1, %v726_v13  ;;  %v729_v18 = vmax.f32 %v711_v14, 0.0  ;;  %v703_v19 = vadd.f32 %v2992_v32, %v702_v16 }
  0xed   : > { %v935_v29 = vadd.f32 %v2992_v32, %v934_v27  ;;  %v2559_v30 = vpop.f32.mrf.mxu0 }
  0xee   : > { %736 = vst.msk [vmem:[#allocation2 + $0x38] sm:$0xff] %vm588_vm1, %v719_v15  ;;  %v749_v20 = vpack.c.bf16 %v719_v15, %v718_v4  ;;  %746 = vst.msk [vmem:[#allocation2 + $0x88] sm:$0xff] %vm588_vm1, %v729_v18  ;;  %v727_v1 = vmax.f32 %v703_v19, 0.0  ;;  %v754_v24 = vpack.c.bf16 %v729_v18, %v728_v8 }
  0xef   : > { %v941_v31 = vmax.f32 %v935_v29, 0.0  ;;  %v937_v33 = vpop.f32.mrf.mxu0 }
  0xf0   : > { %2543 = vmatprep.mubr.msk.bf16.mxu1 %vm588_vm1, %v749_v20  ;;  %744 = vst.msk [vmem:[#allocation2 + $0x78] sm:$0xff] %vm588_vm1, %v727_v1  ;;  %v753_v23 = vpack.c.bf16 %v727_v1, %v726_v13  ;;  %v938_v34 = vadd.f32 %v2992_v32, %v937_v33 }
  0xf1   : > { %2544 = vmatmul.mubr.msk.bf16.gmra.mxu1 %vm588_vm1, %v750_v17  ;;  %v2560_v36 = vpop.f32.mrf.mxu0  ;;  %v944_v37 = vmul.f32 %v943_v35, %v941_v31 }
  0xf2   : > { %2547 = vmatprep.mubr.msk.bf16.mxu1 %vm588_vm1, %v751_v21  ;;  %v942_v38 = vmax.f32 %v938_v34, 0.0 }
  0xf3   : > { %946 = vst.msk [vmem:[#allocation2] sm:$0xff] %vm588_vm1, %v944_v37 }
  0xf4   : > { %v945_v39 = vmul.f32 %v943_v35, %v942_v38 }
  0xf6   : > { %947 = vst.msk [vmem:[#allocation2 + $0x8] sm:$0xff] %vm588_vm1, %v945_v39 }
  0xf9   : > { %2548 = vmatmul.mubr.msk.bf16.gmra.mxu1 %vm588_vm1, %v752_v22 }
  0xfa   : > { %2551 = vmatprep.mubr.msk.bf16.mxu1 %vm588_vm1, %v753_v23 }
 0x101   : > { %2552 = vmatmul.mubr.msk.bf16.gmra.mxu1 %vm588_vm1, %v754_v24 }
 0x102   : > { %2563 = vmatprep.mubr.msk.bf16.mxu1 %vm2819_vm2, %v4306_v28 }
 0x109   : > { %2564 = vmatmul.mubr.msk.bf16.vlgmr.msra.gmra.mxu1 %vm588_vm1, %v950_v49 }
 0x1a9   : > { %v2541_v41 = vpop.f32.mrf.mxu1 }
 0x1aa   : > { %v833_v42 = vadd.f32 %v2541_v41, %v3050_v40 }
 0x1ab   : > { %v824_v43 = vpop.f32.mrf.mxu1 }
 0x1ac   : > { %1937 = vperm.xlu0 %2650, %v833_v42   ;;  %1172 = vperm.xlu1 %2642, %v833_v42   ;;  %v3055_v44 = vadd.f32 %v3050_v40, %v824_v43 }
 0x1ad   : > { %v2542_v54 = vpop.f32.mrf.mxu1 }
 0x1ae   : > { %v3075_v55 = vadd.f32 %v2542_v54, %v3050_v40 }
 0x1af   : > { %v827_v57 = vpop.f32.mrf.mxu1 }
 0x1b0   : > { %2651 = vset.pattern.permute.xlu0 %v4312_v26  ;;  %2643 = vset.pattern.permute.xlu1 %v4320_v45  ;;  %v828_v58 = vadd.f32 %v3050_v40, %v827_v57 }
 0x1b1   : > { %1265 = vperm.xlu1 %2643, %v833_v42   ;;  %1162 = vperm.xlu0 %2651, %v3055_v44   ;;  %v2545_v59 = vpop.f32.mrf.mxu1 }
 0x1b2   : > { %v3100_v60 = vadd.f32 %v2545_v59, %v3050_v40 }
 0x1b3   : > { %v840_v61 = vpop.f32.mrf.mxu1 }
 0x1b4   : > { %v3119_v62 = vadd.f32 %v3050_v40, %v840_v61 }
 0x1b5   : > { %2644 = vset.pattern.permute.xlu1 %v4314_v46  ;;  %2652 = vset.pattern.permute.xlu0 %v4320_v45  ;;  %v2546_v63 = vpop.f32.mrf.mxu1 }
 0x1b6   : > { %1361 = vperm.xlu1 %2644, %v833_v42   ;;  %1257 = vperm.xlu0 %2652, %v3055_v44   ;;  %v3132_v0 = vadd.f32 %v2546_v63, %v3050_v40 }
 0x1b7   : > { %v843_v2 = vpop.f32.mrf.mxu1 }
 0x1b8   : > { %v3141_v3 = vadd.f32 %v3050_v40, %v843_v2 }
 0x1b9   : > { %v2549_v4 = vpop.f32.mrf.mxu1 }
 0x1ba   : > { %2645 = vset.pattern.permute.xlu1 %v4318_v50  ;;  %2655 = vset.pattern.permute.xlu0 %v4308_v51  ;;  %v3167_v7 = vadd.f32 %v2549_v4, %v3050_v40 }
 0x1bb   : > { %1457 = vperm.xlu1 %2645, %v833_v42   ;;  %1641 = vperm.xlu0 %2655, %v3055_v44   ;;  %v856_v12 = vpop.f32.mrf.mxu1 }
 0x1bc   : > { %v3194_v15 = vadd.f32 %v3050_v40, %v856_v12 }
 0x1bd   : > { %v2550_v23 = vpop.f32.mrf.mxu1 }
 0x1be   : > { %v3237_v29 = vadd.f32 %v2550_v23, %v3050_v40 }
 0x1bf   : > { %2646 = vset.pattern.permute.xlu1 %v4316_v52  ;;  %2657 = vset.pattern.permute.xlu0 %v4304_v53  ;;  %v859_v37 = vpop.f32.mrf.mxu1 }
 0x1c0   : > { %1553 = vperm.xlu1 %2646, %v833_v42   ;;  %1833 = vperm.xlu0 %2657, %v3055_v44   ;;  %v3264_v38 = vadd.f32 %v3050_v40, %v859_v37 }
 0x1c4   : > { %2647 = vset.pattern.permute.xlu1 %v4308_v51  ;;  %2660 = vset.pattern.permute.xlu0 %v4320_v45 }
 0x1c5   : > { %1649 = vperm.xlu1 %2647, %v833_v42   ;;  %1269 = vperm.xlu0 %2660, %v3075_v55  }
 0x1c9   : > { %2648 = vset.pattern.permute.xlu1 %v4310_v56  ;;  %2663 = vset.pattern.permute.xlu0 %v4308_v51 }
 0x1ca   : > { %1745 = vperm.xlu1 %2648, %v833_v42   ;;  %1653 = vperm.xlu0 %2663, %v3075_v55  }
 0x1ce   : > { %2649 = vset.pattern.permute.xlu1 %v4304_v53  ;;  %2665 = vset.pattern.permute.xlu0 %v4304_v53 }
 0x1cf   : > { %1841 = vperm.xlu1 %2649, %v833_v42   ;;  %1845 = vperm.xlu0 %2665, %v3075_v55   ;;  %v2553_v42 = vpop.f32.mrf.mxu1 }
 0x1d0   : > { %v3283_v49 = vadd.f32 %v2553_v42, %v3050_v40 }
 0x1d1   : > { %v872_v48 = vpop.f32.mrf.mxu1 }
 0x1d2   : > { %4379 = vst [vmem:[#allocation15_spill] sm:$0xff] %v3283_v49  ;;  %v3314_v37 = vadd.f32 %v3050_v40, %v872_v48 }
 0x1d3   : > { %2653 = vset.pattern.permute.xlu1 %v4314_v46  ;;  %2667 = vset.pattern.permute.xlu0 %v4312_v26 }
 0x1d4   : > { %1353 = vperm.xlu1 %2653, %v3055_v44   ;;  %1167 = vperm.xlu0 %2667, %v828_v58  }
 0x1d8   : > { %2654 = vset.pattern.permute.xlu1 %v4316_v52  ;;  %2669 = vset.pattern.permute.xlu0 %v4314_v46 }
 0x1d9   : > { %1545 = vperm.xlu1 %2654, %v3055_v44   ;;  %1357 = vperm.xlu0 %2669, %v828_v58  }
 0x1dd   : > { %2656 = vset.pattern.permute.xlu1 %v4310_v56  ;;  %2671 = vset.pattern.permute.xlu0 %v4316_v52 }
 0x1de   : > { %1737 = vperm.xlu1 %2656, %v3055_v44   ;;  %1549 = vperm.xlu0 %2671, %v828_v58  }
 0x1e2   : > { %2658 = vset.pattern.permute.xlu1 %v4302_v25  ;;  %2673 = vset.pattern.permute.xlu0 %v4310_v56 }
 0x1e3   : > { %1929 = vperm.xlu1 %2658, %v3055_v44   ;;  %1741 = vperm.xlu0 %2673, %v828_v58  }
 0x1e7   : > { %2659 = vset.pattern.permute.xlu1 %v4312_v26  ;;  %2676 = vset.pattern.permute.xlu0 %v4312_v26 }
 0x1e8   : > { %1177 = vperm.xlu1 %2659, %v3075_v55   ;;  %1192 = vperm.xlu0 %2676, %v3100_v60  }
 0x1ec   : > { %2661 = vset.pattern.permute.xlu1 %v4314_v46  ;;  %2678 = vset.pattern.permute.xlu0 %v4314_v46 }
 0x1ed   : > { %1365 = vperm.xlu1 %2661, %v3075_v55   ;;  %1377 = vperm.xlu0 %2678, %v3100_v60  }
 0x1f1   : > { %2662 = vset.pattern.permute.xlu1 %v4316_v52  ;;  %2680 = vset.pattern.permute.xlu0 %v4316_v52 }
 0x1f2   : > { %1557 = vperm.xlu1 %2662, %v3075_v55   ;;  %1569 = vperm.xlu0 %2680, %v3100_v60  }
 0x1f6   : > { %2664 = vset.pattern.permute.xlu1 %v4310_v56  ;;  %2684 = vset.pattern.permute.xlu0 %v4302_v25 }
 0x1f7   : > { %1749 = vperm.xlu1 %2664, %v3075_v55   ;;  %1953 = vperm.xlu0 %2684, %v3100_v60  }
 0x1fb   : > { %2666 = vset.pattern.permute.xlu1 %v4302_v25  ;;  %2685 = vset.pattern.permute.xlu0 %v4312_v26 }
 0x1fc   : > { %1941 = vperm.xlu1 %2666, %v3075_v55   ;;  %1182 = vperm.xlu0 %2685, %v3119_v62  }
 0x200   : > { %2668 = vset.pattern.permute.xlu1 %v4320_v45  ;;  %2687 = vset.pattern.permute.xlu0 %v4314_v46 }
 0x201   : > { %1261 = vperm.xlu1 %2668, %v828_v58   ;;  %1369 = vperm.xlu0 %2687, %v3119_v62  }
 0x205   : > { %2670 = vset.pattern.permute.xlu1 %v4318_v50  ;;  %2691 = vset.pattern.permute.xlu0 %v4310_v56 }
 0x206   : > { %1453 = vperm.xlu1 %2670, %v828_v58   ;;  %1753 = vperm.xlu0 %2691, %v3119_v62  }
 0x20a   : > { %2672 = vset.pattern.permute.xlu1 %v4308_v51  ;;  %2695 = vset.pattern.permute.xlu0 %v4320_v45 }
 0x20b   : > { %1645 = vperm.xlu1 %2672, %v828_v58   ;;  %1285 = vperm.xlu0 %2695, %v3132_v0  }
 0x20f   : > { %2674 = vset.pattern.permute.xlu1 %v4304_v53  ;;  %2699 = vset.pattern.permute.xlu0 %v4310_v56 }
 0x210   : > { %1837 = vperm.xlu1 %2674, %v828_v58   ;;  %1765 = vperm.xlu0 %2699, %v3132_v0  }
 0x214   : > { %2675 = vset.pattern.permute.xlu1 %v4302_v25  ;;  %2703 = vset.pattern.permute.xlu0 %v4320_v45 }
 0x215   : > { %1933 = vperm.xlu1 %2675, %v828_v58   ;;  %1277 = vperm.xlu0 %2703, %v3141_v3   ;;  %v2554_v58 = vpop.f32.mrf.mxu1 }
 0x217   : > { %v3301_v61 = vpop.f32.mrf.mxu1 }
 0x219   : > { %2677 = vset.pattern.permute.xlu1 %v4320_v45  ;;  %2705 = vset.pattern.permute.xlu0 %v4316_v52  ;;  %v988_v2 = vpop.f32.mrf.mxu1 }
 0x21a   : > { %1281 = vperm.xlu1 %2677, %v3100_v60   ;;  %1565 = vperm.xlu0 %2705, %v3141_v3   ;;  %v989_v4 = vadd.f32 %v2992_v32, %v988_v2 }
 0x21b   : > { %v2565_v12 = vpop.f32.mrf.mxu1 }
 0x21c   : > { %v995_v23 = vmax.f32 %v989_v4, 0.0 }
 0x21d   : > { %v991_v28 = vpop.f32.mrf.mxu1 }
 0x21e   : > { %2679 = vset.pattern.permute.xlu1 %v4318_v50  ;;  %2706 = vset.pattern.permute.xlu0 %v4308_v51  ;;  %v992_v4 = vadd.f32 %v2992_v32, %v991_v28 }
 0x21f   : > { %1473 = vperm.xlu1 %2679, %v3100_v60   ;;  %1661 = vperm.xlu0 %2706, %v3141_v3   ;;  %v2566_v12 = vpop.f32.mrf.mxu1 }
 0x220   : > { %v996_v48 = vmax.f32 %v992_v4, 0.0  ;;  %v3345_v4 = vld [vmem:[#allocation2 + $0x38] sm:$0xff]  ;;  %v3348_v12 = vadd.f32 %v2554_v58, %v3050_v40 }
 0x222   : > { %4385 = vst [vmem:[#allocation20_spill] sm:$0xff] %v3348_v12 }
 0x223   : > { %2681 = vset.pattern.permute.xlu1 %v4308_v51  ;;  %2708 = vset.pattern.permute.xlu0 %v4304_v53 }
 0x224   : > { %1665 = vperm.xlu1 %2681, %v3100_v60   ;;  %1853 = vperm.xlu0 %2708, %v3141_v3  }
 0x227   : > { %v3158_v5 = vpop.permute.xlu0 %1937  ;;  %v3160_v6 = vpop.permute.xlu1 %1172 }
 0x228   : > { %2682 = vset.pattern.permute.xlu1 %v4310_v56  ;;  %2709 = vset.pattern.permute.xlu0 %v4302_v25 }
 0x229   : > { %1761 = vperm.xlu1 %2682, %v3100_v60   ;;  %1949 = vperm.xlu0 %2709, %v3141_v3  }
 0x22c   : > { %v3169_v8 = vpop.permute.xlu1 %1265  ;;  %v3171_v9 = vpop.permute.xlu0 %1162 }
 0x22d   : > { %2683 = vset.pattern.permute.xlu1 %v4304_v53  ;;  %2710 = vset.pattern.permute.xlu0 %v4312_v26 }
 0x22e   : > { %1857 = vperm.xlu1 %2683, %v3100_v60   ;;  %1212 = vperm.xlu0 %2710, %v3167_v7  }
 0x231   : > { %v3177_v10 = vpop.permute.xlu1 %1361  ;;  %v3179_v11 = vpop.permute.xlu0 %1257 }
 0x232   : > { %2686 = vset.pattern.permute.xlu1 %v4320_v45  ;;  %2712 = vset.pattern.permute.xlu0 %v4314_v46 }
 0x233   : > { %1273 = vperm.xlu1 %2686, %v3119_v62   ;;  %1393 = vperm.xlu0 %2712, %v3167_v7  }
 0x236   : > { %v3185_v13 = vpop.permute.xlu1 %1457  ;;  %v3187_v14 = vpop.permute.xlu0 %1641 }
 0x237   : > { %4367 = vst [vmem:[#allocation3_spill] sm:$0xff] %v3187_v14  ;;  %2688 = vset.pattern.permute.xlu1 %v4318_v50  ;;  %2718 = vset.pattern.permute.xlu0 %v4302_v25  ;;  %v3470_v14 = vld [vmem:[#allocation2 + $0x20] sm:$0xff] }
 0x238   : > { %1465 = vperm.xlu1 %2688, %v3119_v62   ;;  %1969 = vperm.xlu0 %2718, %v3167_v7  }
 0x23b   : > { %v3196_v16 = vpop.permute.xlu1 %1553  ;;  %v3198_v17 = vpop.permute.xlu0 %1833 }
 0x23c   : > { %4368 = vst [vmem:[#allocation4_spill] sm:$0xff] %v3198_v17  ;;  %2689 = vset.pattern.permute.xlu1 %v4316_v52  ;;  %2719 = vset.pattern.permute.xlu0 %v4312_v26 }
 0x23d   : > { %1561 = vperm.xlu1 %2689, %v3119_v62   ;;  %1202 = vperm.xlu0 %2719, %v3194_v15  }
 0x240   : > { %v3204_v18 = vpop.permute.xlu1 %1649  ;;  %v3206_v19 = vpop.permute.xlu0 %1269 }
 0x241   : > { %4369 = vst [vmem:[#allocation5_spill] sm:$0xff] %v3206_v19  ;;  %2690 = vset.pattern.permute.xlu1 %v4308_v51  ;;  %2721 = vset.pattern.permute.xlu0 %v4314_v46  ;;  %v4403_v19 = vmov 2  }
 0x242   : > { %1657 = vperm.xlu1 %2690, %v3119_v62   ;;  %1385 = vperm.xlu0 %2721, %v3194_v15  }
 0x245   : > { %v3212_v20 = vpop.permute.xlu1 %1745  ;;  %v3214_v21 = vpop.permute.xlu0 %1653 }
 0x246   : > { %4370 = vst [vmem:[#allocation6_spill] sm:$0xff] %v3214_v21  ;;  %2692 = vset.pattern.permute.xlu1 %v4304_v53  ;;  %2723 = vset.pattern.permute.xlu0 %v4316_v52  ;;  %v4395_v21 = vmov 7  }
 0x247   : > { %1849 = vperm.xlu1 %2692, %v3119_v62   ;;  %1577 = vperm.xlu0 %2723, %v3194_v15  }
 0x24a   : > { %v3220_v1 = vpop.permute.xlu1 %1841  ;;  %v3222_v22 = vpop.permute.xlu0 %1845 }
 0x24b   : > { %4371 = vst [vmem:[#allocation7_spill] sm:$0xff] %v3222_v22  ;;  %2693 = vset.pattern.permute.xlu1 %v4302_v25  ;;  %2724 = vset.pattern.permute.xlu0 %v4308_v51 }
 0x24c   : > { %1945 = vperm.xlu1 %2693, %v3119_v62   ;;  %1673 = vperm.xlu0 %2724, %v3194_v15  }
 0x24f   : > { %v3228_v24 = vpop.permute.xlu1 %1353  ;;  %v3230_v27 = vpop.permute.xlu0 %1167 }
 0x250   : > { %4372 = vst [vmem:[#allocation8_spill] sm:$0xff] %v3228_v24  ;;  %2694 = vset.pattern.permute.xlu1 %v4312_v26  ;;  %2726 = vset.pattern.permute.xlu0 %v4304_v53 }
 0x251   : > { %1197 = vperm.xlu1 %2694, %v3132_v0   ;;  %1865 = vperm.xlu0 %2726, %v3194_v15  }
 0x254   : > { %v3239_v30 = vpop.permute.xlu1 %1545  ;;  %v3241_v31 = vpop.permute.xlu0 %1357 }
 0x255   : > { %4373 = vst [vmem:[#allocation9_spill] sm:$0xff] %v3239_v30  ;;  %2696 = vset.pattern.permute.xlu1 %v4314_v46  ;;  %2729 = vset.pattern.permute.xlu0 %v4320_v45 }
 0x256   : > { %1381 = vperm.xlu1 %2696, %v3132_v0   ;;  %1301 = vperm.xlu0 %2729, %v3237_v29  }
 0x259   : > { %v3247_v33 = vpop.permute.xlu1 %1737  ;;  %v3249_v34 = vpop.permute.xlu0 %1549 }
 0x25a   : > { %4374 = vst [vmem:[#allocation10_spill] sm:$0xff] %v3247_v33  ;;  %2697 = vset.pattern.permute.xlu1 %v4316_v52  ;;  %2732 = vset.pattern.permute.xlu0 %v4308_v51 }
 0x25b   : > { %1573 = vperm.xlu1 %2697, %v3132_v0   ;;  %1685 = vperm.xlu0 %2732, %v3237_v29  }
 0x25e   : > { %v3255_v35 = vpop.permute.xlu1 %1929  ;;  %v3257_v36 = vpop.permute.xlu0 %1741 }
 0x25f   : > { %4375 = vst [vmem:[#allocation11_spill] sm:$0xff] %v3255_v35  ;;  %4376 = vst [vmem:[#allocation12_spill] sm:$0xff] %v3257_v36  ;;  %2698 = vset.pattern.permute.xlu1 %v4308_v51  ;;  %2734 = vset.pattern.permute.xlu0 %v4304_v53 }
 0x260   : > { %1669 = vperm.xlu1 %2698, %v3132_v0   ;;  %1877 = vperm.xlu0 %2734, %v3237_v29  }
 0x263   : > { %v3266_v39 = vpop.permute.xlu1 %1177  ;;  %v3268_v41 = vpop.permute.xlu0 %1192 }
 0x264   : > { %4377 = vst [vmem:[#allocation13_spill] sm:$0xff] %v3266_v39  ;;  %2700 = vset.pattern.permute.xlu1 %v4304_v53  ;;  %2737 = vset.pattern.permute.xlu0 %v4320_v45  ;;  %v997_v53 = vstv %s893_s25  ;;  %s4210_s25 = scalar_lea.vmem %s4300_s11, %s4561_s14 }
 0x265   : > { %1861 = vperm.xlu1 %2700, %v3132_v0   ;;  %1293 = vperm.xlu0 %2737, %v3264_v38   ;;  %v998_v2 = vmul.f32 %v997_v53, %v995_v23  ;;  %v4384_v23 = vmov 6  }
 0x267   : > { %1001 = vst.msk [vmem:[#allocation2 + $0x90] sm:$0xff] %vm588_vm1, %v998_v2  ;;  %v1003_v2 = vlaneseq }
 0x268   : > { %v3274_v43 = vpop.permute.xlu1 %1365  ;;  %v3276_v47 = vpop.permute.xlu0 %1377 }
 0x269   : > { %4378 = vst [vmem:[#allocation14_spill] sm:$0xff] %v3274_v43  ;;  %2701 = vset.pattern.permute.xlu1 %v4302_v25  ;;  %2741 = vset.pattern.permute.xlu0 %v4310_v56 }
 0x26a   : > { %1957 = vperm.xlu1 %2701, %v3132_v0   ;;  %1773 = vperm.xlu0 %2741, %v3264_v38  }
 0x26d   : > { %v3285_v54 = vpop.permute.xlu1 %1557  ;;  %v3287_v57 = vpop.permute.xlu0 %1569 }
 0x26e   : > { %4380 = vst [vmem:[#allocation16_spill] sm:$0xff] %v3285_v54  ;;  %2702 = vset.pattern.permute.xlu1 %v4312_v26  ;;  %2744 = vset.pattern.permute.xlu0 %v4312_v26 }
 0x26f   : > { %1187 = vperm.xlu1 %2702, %v3141_v3   ;;  %1232 = vperm.xlu0 %2744, %v3283_v49  }
 0x272   : > { %v3293_v59 = vpop.permute.xlu1 %1749  ;;  %v3295_v60 = vpop.permute.xlu0 %1953 }
 0x273   : > { %4381 = vst [vmem:[#allocation17_spill] sm:$0xff] %v3293_v59  ;;  %2704 = vset.pattern.permute.xlu1 %v4314_v46  ;;  %2746 = vset.pattern.permute.xlu0 %v4314_v46  ;;  %v3374_v59 = vld [vmem:[#allocation2 + $0x40] sm:$0xff] }
 0x274   : > { %1373 = vperm.xlu1 %2704, %v3141_v3   ;;  %1409 = vperm.xlu0 %2746, %v3283_v49   ;;  %v1246_v22 = vmul.f32 %v3268_v41, %v3374_v59 }
 0x277   : > { %v3304_v62 = vpop.permute.xlu1 %1941  ;;  %v3306_v63 = vpop.permute.xlu0 %1182 }
 0x278   : > { %4382 = vst [vmem:[#allocation18_spill] sm:$0xff] %v3304_v62  ;;  %2707 = vset.pattern.permute.xlu1 %v4310_v56  ;;  %2748 = vset.pattern.permute.xlu0 %v4316_v52  ;;  %v3360_v62 = vshrl.u32 %v1003_v2, 7  ;;  %v4391_v2 = vmov 0.0  }
 0x279   : > { %1757 = vperm.xlu1 %2707, %v3141_v3   ;;  %1601 = vperm.xlu0 %2748, %v3283_v49  }
 0x27a   : > { %vm1006_vm3 = vcmp.ge.s32.totalorder %v3360_v62, 1  ;;  %vm1058_vm4 = vcmp.lt.s32.totalorder %v3360_v62, 1  ;;  %vm1119_vm5 = vcmp.lt.s32.totalorder %v3360_v62, 7 }
 0x27c   : > { %v3316_v42 = vpop.permute.xlu1 %1261  ;;  %v3318_v25 = vpop.permute.xlu0 %1369 }
 0x27d   : > { %2711 = vset.pattern.permute.xlu1 %v4320_v45  ;;  %2752 = vset.pattern.permute.xlu0 %v4312_v26  ;;  %v999_v26 = vmul.f32 %v997_v53, %v996_v48  ;;  %v3343_v53 = vld [vmem:[#allocation2 + $0x30] sm:$0xff] }
 0x27e   : > { %1297 = vperm.xlu1 %2711, %v3167_v7   ;;  %1222 = vperm.xlu0 %2752, %v3314_v37  }
 0x27f   : > { %1002 = vst.msk [vmem:[#allocation2 + $0x98] sm:$0xff] %vm588_vm1, %v999_v26 }
 0x281   : > { %v3326_v51 = vpop.permute.xlu1 %1453  ;;  %v3328_v56 = vpop.permute.xlu0 %1753 }
 0x282   : > { %2713 = vset.pattern.permute.xlu1 %v4318_v50  ;;  %2754 = vset.pattern.permute.xlu0 %v4314_v46  ;;  %v4388_v46 = vmov 5   ;;  %v4323_v50 = vrot.slane %v3345_v4, 7 }
 0x283   : > { %1489 = vperm.xlu1 %2713, %v3167_v7   ;;  %1401 = vperm.xlu0 %2754, %v3314_v37  }
 0x286   : > { %v3335_v28 = vpop.permute.xlu1 %1645  ;;  %v3337_v32 = vpop.permute.xlu0 %1285 }
 0x287   : > { %4383 = vst [vmem:[#allocation19_spill] sm:$0xff] %v3337_v32  ;;  %2714 = vset.pattern.permute.xlu1 %v4316_v52  ;;  %2758 = vset.pattern.permute.xlu0 %v4384_v23  ;;  %v4322_v52 = vrot.slane %v3343_v53, 7  ;;  %v3376_v32 = vld [vmem:[#allocation2 + $0x48] sm:$0xff] }
 0x288   : > { %1585 = vperm.xlu1 %2714, %v3167_v7   ;;  %1785 = vperm.xlu0 %2758, %v3314_v37  }
 0x28b   : > { %v3350_v26 = vpop.permute.xlu1 %1837  ;;  %v3352_v48 = vpop.permute.xlu0 %1765 }
 0x28c   : > { %4386 = vst [vmem:[#allocation21_spill] sm:$0xff] %v3350_v26  ;;  %4387 = vst [vmem:[#allocation22_spill] sm:$0xff] %v3352_v48  ;;  %2715 = vset.pattern.permute.xlu1 %v4388_v46  ;;  %2761 = vset.pattern.permute.xlu0 %v4320_v45  ;;  %v1072_v45 = vsel %vm1058_vm4, %v4323_v50, %v4322_v52  ;;  %v4324_v50 = vrot.slane %v3376_v32, 7  ;;  %v4325_v26 = vrot.slane %v3345_v4, 1  ;;  %v4396_v52 = vmov 0  }
 0x28d   : > { %1681 = vperm.xlu1 %2715, %v3167_v7   ;;  %1317 = vperm.xlu0 %2761, %v3348_v12  }
 0x290   : > { %v3364_v58 = vpop.permute.xlu1 %1933  ;;  %v3366_v48 = vpop.permute.xlu0 %1277 }
 0x291   : > { %4389 = vst [vmem:[#allocation23_spill] sm:$0xff] %v3364_v58  ;;  %4390 = vst [vmem:[#allocation24_spill] sm:$0xff] %v3366_v48  ;;  %2716 = vset.pattern.permute.xlu1 %v4384_v23  ;;  %2765 = vset.pattern.permute.xlu0 %v4384_v23  ;;  %v3383_v48 = vsel %vm1006_vm3, 1.0, %v4391_v2  ;;  %v3392_v58 = vadd.f32 %v3050_v40, %v3301_v61  ;;  %v1422_v40 = vmul.f32 %v3276_v47, %v3343_v53  ;;  %v3424_v47 = vld [vmem:[#allocation2 + $0x58] sm:$0xff] }
 0x292   : > { %1777 = vperm.xlu1 %2716, %v3167_v7   ;;  %1797 = vperm.xlu0 %2765, %v3348_v12   ;;  %4392 = vst [vmem:[#allocation25_spill] sm:$0xff] %v3383_v48  ;;  %v3386_v54 = vmul.f32 %v3383_v48, %v1072_v45  ;;  %v4397_v61 = vrot.slane %v3374_v59, 7 }
 0x293   : > { %4393 = vst [vmem:[#allocation26_spill] sm:$0xff] %v3392_v58 }
 0x294   : > { %v1073_v41 = vsel %vm1058_vm4, %v4324_v50, %v4397_v61  ;;  %v4401_v61 = vmov 8  }
 0x295   : > { %v1282_v35 = vpop.permute.xlu1 %1281  ;;  %v3394_v33 = vpop.permute.xlu0 %1565 }
 0x296   : > { %4394 = vst [vmem:[#allocation27_spill] sm:$0xff] %v3394_v33  ;;  %v1326_v45 = vmul.f32 %v1282_v35, %v3386_v54  ;;  %2717 = vset.pattern.permute.xlu1 %v4395_v21  ;;  %2767 = vset.pattern.permute.xlu0 %v4396_v52  ;;  %v4398_v35 = vrot.slane %v3343_v53, 1  ;;  %v3422_v33 = vld [vmem:[#allocation2 + $0x50] sm:$0xff] }
 0x297   : > { %1873 = vperm.xlu1 %2717, %v3167_v7   ;;  %1309 = vperm.xlu0 %2767, %v3392_v58  }
 0x298   : > { %v1342_v30 = vadd.f32 %v1326_v45, %v1246_v22  ;;  %v3420_v7 = vsel %vm1119_vm5, %v4398_v35, %v4325_v26  ;;  %v3429_v22 = vmul.f32 %v3383_v48, %v1073_v41  ;;  %v4329_v41 = vrot.slane %v3374_v59, 1 }
 0x29a   : > { %v1474_v17 = vpop.permute.xlu1 %1473  ;;  %v1438_v43 = vadd.f32 %v1422_v40, %v1342_v30  ;;  %v3426_v36 = vpop.permute.xlu0 %1661  ;;  %4400 = vst [vmem:[#allocation29_spill] sm:$0xff] %v3429_v22  ;;  %v1614_v35 = vmul.f32 %v3287_v57, %v3429_v22  ;;  %v4326_v30 = vrot.slane %v3422_v33, 7  ;;  %v4327_v40 = vrot.slane %v3424_v47, 7  ;;  %v3454_v57 = vld [vmem:[#allocation2 + $0x28] sm:$0xff] }
 0x29b   : > { %4399 = vst [vmem:[#allocation28_spill] sm:$0xff] %v3426_v36  ;;  %v1518_v45 = vmul.f32 %v1474_v17, %v3420_v7  ;;  %2720 = vset.pattern.permute.xlu1 %v4396_v52  ;;  %2770 = vset.pattern.permute.xlu0 %v4401_v61  ;;  %v4328_v17 = vrot.slane %v3376_v32, 1 }
 0x29c   : > { %1289 = vperm.xlu1 %2720, %v3194_v15   ;;  %1977 = vperm.xlu0 %2770, %v3314_v37  }
 0x29d   : > { %v1534_v50 = vadd.f32 %v1518_v45, %v1438_v43  ;;  %v1074_v43 = vsel %vm1058_vm4, %v4327_v40, %v4326_v30  ;;  %v4334_v30 = vrot.slane %v3454_v57, 7 }
 0x29f   : > { %v1666_v26 = vpop.permute.xlu1 %1665  ;;  %v1630_v36 = vadd.f32 %v1614_v35, %v1534_v50  ;;  %v3442_v24 = vpop.permute.xlu0 %1853  ;;  %v3462_v50 = vsel %vm1119_vm5, %v4329_v41, %v4328_v17  ;;  %v4332_v17 = vrot.slane %v3470_v14, 7 }
 0x2a0   : > { %4402 = vst [vmem:[#allocation30_spill] sm:$0xff] %v3442_v24  ;;  %2722 = vset.pattern.permute.xlu1 %v4403_v19  ;;  %2771 = vset.pattern.permute.xlu0 %v4403_v19  ;;  %4404 = vst [vmem:[#allocation31_spill] sm:$0xff] %v3462_v50  ;;  %v1710_v45 = vmul.f32 %v1666_v26, %v3462_v50 }
 0x2a1   : > { %1481 = vperm.xlu1 %2722, %v3194_v15   ;;  %1449 = vperm.xlu0 %2771, %v3055_v44   ;;  %v3466_v44 = vmul.f32 %v3383_v48, %v1074_v43  ;;  %v4333_v43 = vrot.slane %v3424_v47, 1 }
 0x2a2   : > { %v1726_v41 = vadd.f32 %v1710_v45, %v1630_v36  ;;  %v4407_v36 = vrot.slane %v3422_v33, 1 }
 0x2a3   : > { %4405 = vst [vmem:[#allocation32_spill] sm:$0xff] %v3466_v44 }
 0x2a4   : > { %v1762_v35 = vpop.permute.xlu1 %1761  ;;  %v3468_v24 = vpop.permute.xlu0 %1949 }
 0x2a5   : > { %4406 = vst [vmem:[#allocation33_spill] sm:$0xff] %v3468_v24  ;;  %2725 = vset.pattern.permute.xlu1 %v4384_v23  ;;  %1461 = vperm.xlu0 %2771, %v3075_v55   ;;  %v1806_v40 = vmul.f32 %v1762_v35, %v3466_v44  ;;  %v1071_v55 = vsel %vm1058_vm4, %v4334_v30, %v4332_v17  ;;  %v4414_v30 = vmov 3  }
 0x2a6   : > { %1769 = vperm.xlu1 %2725, %v3194_v15  }
 0x2a7   : > { %v1822_v35 = vadd.f32 %v1806_v40, %v1726_v41  ;;  %v3503_v40 = vmul.f32 %v3383_v48, %v1071_v55 }
 0x2a9   : > { %v1858_v24 = vpop.permute.xlu1 %1857  ;;  %1469 = vperm.xlu0 %2771, %v3141_v3   ;;  %v3481_v50 = vpop.permute.xlu0 %1212  ;;  %v3497_v3 = vsel %vm1119_vm5, %v4407_v36, %v4333_v43  ;;  %v1244_v36 = vmul.f32 %v3306_v63, %v3343_v53  ;;  %v4336_v63 = vrot.slane %v3470_v14, 1 }
 0x2aa   : > { %v1902_v26 = vmul.f32 %v1858_v24, %v3422_v33  ;;  %2727 = vset.pattern.permute.xlu1 %v4401_v61  ;;  %4408 = vst [vmem:[#allocation34_spill] sm:$0xff] %v3497_v3  ;;  %v1998_v45 = vmul.f32 %v3295_v60, %v3497_v3  ;;  %v1420_v60 = vmul.f32 %v3318_v25, %v3470_v14  ;;  %v2094_v25 = vld [vmem:[%s4298_s9] sm:$0xf] }
 0x2ab   : > { %1961 = vperm.xlu1 %2727, %v3194_v15   ;;  %v4410_v15 = vmov 4   ;;  %2590 = vmatprep.subr.msk.bf16.mxu0 %vm613_vm0, %v2094_v25 }
 0x2ac   : > { %v1918_v39 = vadd.f32 %v1902_v26, %v1822_v35 }
 0x2ad   : > { %1477 = vperm.xlu0 %2771, %v3132_v0   ;;  %v4335_v0 = vrot.slane %v3454_v57, 1 }
 0x2ae   : > { %v3506_v24 = vadd.f32 %v1998_v45, %v1918_v39  ;;  %v1274_v41 = vpop.permute.xlu1 %1273  ;;  %v3508_v17 = vpop.permute.xlu0 %1393  ;;  %v4412_v45 = vmov 1  }
 0x2af   : > { %v1324_v43 = vmul.f32 %v1274_v41, %v3503_v40  ;;  %2728 = vset.pattern.permute.xlu1 %v4410_v15  ;;  %v3536_v41 = vsel %vm1119_vm5, %v4336_v63, %v4335_v0  ;;  %v1804_v63 = vmul.f32 %v3328_v56, %v3429_v22 }
 0x2b0   : > { %4409 = vst [vmem:[#allocation35_spill] sm:$0xff] %v3506_v24  ;;  %1217 = vperm.xlu1 %2728, %v3237_v29  }
 0x2b1   : > { %v1340_v26 = vadd.f32 %v1324_v43, %v1244_v36  ;;  %1485 = vperm.xlu0 %2771, %v3264_v38   ;;  %v2127_v43 = vsel %vm613_vm0, %v2094_v25, 0 }
 0x2b2   : > { %2568 = vmatpush3.bf16.msra.mxu0 %v2127_v43 }
 0x2b3   : > { %v1466_v39 = vpop.permute.xlu1 %1465  ;;  %v1436_v55 = vadd.f32 %v1420_v60, %v1340_v26  ;;  %v3519_v35 = vpop.permute.xlu0 %1969 }
 0x2b4   : > { %4411 = vst [vmem:[#allocation36_spill] sm:$0xff] %v3519_v35  ;;  %2730 = vset.pattern.permute.xlu1 %v4412_v45  ;;  %v1516_v36 = vmul.f32 %v1466_v39, %v3536_v41 }
 0x2b5   : > { %1397 = vperm.xlu1 %2730, %v3237_v29   ;;  %1493 = vperm.xlu0 %2771, %v3237_v29  }
 0x2b6   : > { %v1532_v24 = vadd.f32 %v1516_v36, %v1436_v55 }
 0x2b8   : > { %v1562_v60 = vpop.permute.xlu1 %1561  ;;  %v3539_v26 = vpop.permute.xlu0 %1202 }
 0x2b9   : > { %4413 = vst [vmem:[#allocation37_spill] sm:$0xff] %v3539_v26  ;;  %2731 = vset.pattern.permute.xlu1 %v4414_v30  ;;  %1509 = vperm.xlu0 %2771, %v3348_v12   ;;  %v1612_v25 = vmul.f32 %v1562_v60, %v3386_v54 }
 0x2ba   : > { %1589 = vperm.xlu1 %2731, %v3237_v29  }
 0x2bb   : > { %v1628_v43 = vadd.f32 %v1612_v25, %v1532_v24 }
 0x2bd   : > { %v1658_v35 = vpop.permute.xlu1 %1657  ;;  %1501 = vperm.xlu0 %2771, %v3392_v58   ;;  %v3546_v0 = vpop.permute.xlu0 %1385 }
 0x2be   : > { %4415 = vst [vmem:[#allocation38_spill] sm:$0xff] %v3546_v0  ;;  %v1708_v39 = vmul.f32 %v1658_v35, %v3420_v7  ;;  %2733 = vset.pattern.permute.xlu1 %v4384_v23 }
 0x2bf   : > { %1781 = vperm.xlu1 %2733, %v3237_v29  }
 0x2c0   : > { %v1724_v26 = vadd.f32 %v1708_v39, %v1628_v43 }
 0x2c1   : > { %2772 = vset.pattern.permute.xlu0 %v4414_v30 }
 0x2c2   : > { %v3554_v60 = vpop.permute.xlu1 %1849  ;;  %v3556_v55 = vadd.f32 %v1804_v63, %v1724_v26  ;;  %1597 = vperm.xlu0 %2772, %v3392_v58   ;;  %v3559_v36 = vpop.permute.xlu0 %1577 }
 0x2c3   : > { %4416 = vst [vmem:[#allocation39_spill] sm:$0xff] %v3554_v60  ;;  %4418 = vst [vmem:[#allocation41_spill] sm:$0xff] %v3559_v36  ;;  %2735 = vset.pattern.permute.xlu1 %v4401_v61  ;;  %v1005_v60 = vadd.s32 8, %v3360_v62 }
 0x2c4   : > { %4417 = vst [vmem:[#allocation40_spill] sm:$0xff] %v3556_v55  ;;  %1973 = vperm.xlu1 %2735, %v3237_v29  }
 0x2c5   : > { %vm1013_vm6 = vcmp.le.s32.totalorder %v1005_v60, 14 }
 0x2c6   : > { %2773 = vset.pattern.permute.xlu0 %v4388_v46 }
 0x2c7   : > { %v3564_v24 = vpop.permute.xlu1 %1945  ;;  %1693 = vperm.xlu0 %2773, %v3392_v58   ;;  %v3567_v56 = vpop.permute.xlu0 %1673 }
 0x2c8   : > { %4419 = vst [vmem:[#allocation42_spill] sm:$0xff] %v3564_v24  ;;  %4420 = vst [vmem:[#allocation43_spill] sm:$0xff] %v3567_v56  ;;  %2736 = vset.pattern.permute.xlu1 %v4410_v15  ;;  %v3635_v24 = vld [vmem:[#allocation2 + $0x68] sm:$0xff]  ;;  %v3648_v56 = vld [vmem:[#allocation2] sm:$0xff] }
 0x2c9   : > { %1207 = vperm.xlu1 %2736, %v3264_v38   ;;  %4440 = vst [vmem:[#allocation63_spill] sm:$0xff] %v3648_v56  ;;  %v1115_v15 = vrot.slane %v3635_v24, 1 }
 0x2cb   : > { %2775 = vset.pattern.permute.xlu0 %v4395_v21 }
 0x2cc   : > { %v3572_v35 = vpop.permute.xlu1 %1197  ;;  %1885 = vperm.xlu0 %2775, %v3392_v58   ;;  %v3575_v63 = vpop.permute.xlu0 %1865 }
 0x2cd   : > { %4421 = vst [vmem:[#allocation44_spill] sm:$0xff] %v3572_v35  ;;  %4422 = vst [vmem:[#allocation45_spill] sm:$0xff] %v3575_v63  ;;  %2738 = vset.pattern.permute.xlu1 %v4412_v45 }
 0x2ce   : > { %1389 = vperm.xlu1 %2738, %v3264_v38  }
 0x2d0   : > { %2777 = vset.pattern.permute.xlu0 %v4401_v61 }
 0x2d1   : > { %v3580_v29 = vpop.permute.xlu1 %1381  ;;  %1989 = vperm.xlu0 %2777, %v3348_v12   ;;  %v3583_v26 = vpop.permute.xlu0 %1301 }
 0x2d2   : > { %4423 = vst [vmem:[#allocation46_spill] sm:$0xff] %v3580_v29  ;;  %4424 = vst [vmem:[#allocation47_spill] sm:$0xff] %v3583_v26  ;;  %2739 = vset.pattern.permute.xlu1 %v4414_v30 }
 0x2d3   : > { %1581 = vperm.xlu1 %2739, %v3264_v38  }
 0x2d6   : > { %v3587_v25 = vpop.permute.xlu1 %1573  ;;  %v3589_v43 = vpop.permute.xlu0 %1685 }
 0x2d7   : > { %4425 = vst [vmem:[#allocation48_spill] sm:$0xff] %v3587_v25  ;;  %4426 = vst [vmem:[#allocation49_spill] sm:$0xff] %v3589_v43  ;;  %2740 = vset.pattern.permute.xlu1 %v4388_v46 }
 0x2d8   : > { %1677 = vperm.xlu1 %2740, %v3264_v38  }
 0x2db   : > { %v3593_v39 = vpop.permute.xlu1 %1669  ;;  %v3595_v58 = vpop.permute.xlu0 %1877 }
 0x2dc   : > { %4427 = vst [vmem:[#allocation50_spill] sm:$0xff] %v3593_v39  ;;  %4428 = vst [vmem:[#allocation51_spill] sm:$0xff] %v3595_v58  ;;  %2742 = vset.pattern.permute.xlu1 %v4395_v21 }
 0x2dd   : > { %1869 = vperm.xlu1 %2742, %v3264_v38  }
 0x2e0   : > { %v3599_v26 = vpop.permute.xlu1 %1861  ;;  %v3601_v55 = vpop.permute.xlu0 %1293 }
 0x2e1   : > { %4429 = vst [vmem:[#allocation52_spill] sm:$0xff] %v3599_v26  ;;  %4430 = vst [vmem:[#allocation53_spill] sm:$0xff] %v3601_v55  ;;  %2743 = vset.pattern.permute.xlu1 %v4401_v61  ;;  %v3633_v26 = vld [vmem:[#allocation2 + $0x60] sm:$0xff] }
 0x2e2   : > { %1965 = vperm.xlu1 %2743, %v3264_v38  }
 0x2e5   : > { %v3605_v43 = vpop.permute.xlu1 %1957  ;;  %v3607_v25 = vpop.permute.xlu0 %1773 }
 0x2e6   : > { %4431 = vst [vmem:[#allocation54_spill] sm:$0xff] %v3605_v43  ;;  %4432 = vst [vmem:[#allocation55_spill] sm:$0xff] %v3607_v25  ;;  %2745 = vset.pattern.permute.xlu1 %v4396_v52  ;;  %v3628_v43 = vld [vmem:[#allocation2 + $0x18] sm:$0xff] }
 0x2e7   : > { %1313 = vperm.xlu1 %2745, %v3283_v49   ;;  %v1110_v45 = vrot.slane %v3628_v43, 1 }
 0x2ea   : > { %v3611_v58 = vpop.permute.xlu1 %1187  ;;  %v3613_v39 = vpop.permute.xlu0 %1232 }
 0x2eb   : > { %4433 = vst [vmem:[#allocation56_spill] sm:$0xff] %v3611_v58  ;;  %4434 = vst [vmem:[#allocation57_spill] sm:$0xff] %v3613_v39  ;;  %2747 = vset.pattern.permute.xlu1 %v4403_v19  ;;  %v3631_v39 = vld [vmem:[#allocation2 + $0x10] sm:$0xff] }
 0x2ec   : > { %1505 = vperm.xlu1 %2747, %v3283_v49  }
 0x2ef   : > { %v3617_v55 = vpop.permute.xlu1 %1373  ;;  %v3619_v61 = vpop.permute.xlu0 %1409 }
 0x2f0   : > { %4435 = vst [vmem:[#allocation58_spill] sm:$0xff] %v3617_v55  ;;  %4436 = vst [vmem:[#allocation59_spill] sm:$0xff] %v3619_v61  ;;  %2749 = vset.pattern.permute.xlu1 %v4388_v46  ;;  %v3650_v61 = vld [vmem:[#allocation2 + $0x8] sm:$0xff] }
 0x2f1   : > { %1697 = vperm.xlu1 %2749, %v3283_v49   ;;  %v1048_v58 = vrot.slane %v3650_v61, 7 }
 0x2f4   : > { %v3623_v38 = vpop.permute.xlu1 %1757  ;;  %v3625_v25 = vpop.permute.xlu0 %1601 }
 0x2f5   : > { %4437 = vst [vmem:[#allocation60_spill] sm:$0xff] %v3623_v38  ;;  %4438 = vst [vmem:[#allocation61_spill] sm:$0xff] %v3625_v25  ;;  %2750 = vset.pattern.permute.xlu1 %v4384_v23  ;;  %v1250_v25 = vmul.f32 %v3481_v50, %v3633_v26  ;;  %v4343_v38 = vrot.slane %v3631_v39, 7 }
 0x2f6   : > { %1793 = vperm.xlu1 %2750, %v3283_v49  }
 0x2f9   : > { %v1298_v29 = vpop.permute.xlu1 %1297  ;;  %v3638_v63 = vpop.permute.xlu0 %1222 }
 0x2fa   : > { %4439 = vst [vmem:[#allocation62_spill] sm:$0xff] %v3638_v63  ;;  %v1330_v23 = vmul.f32 %v1298_v29, %v3466_v44  ;;  %2751 = vset.pattern.permute.xlu1 %v4395_v21  ;;  %v1426_v63 = vmul.f32 %v3508_v17, %v3422_v33  ;;  %v4441_v29 = vrot.slane %v3628_v43, 7  ;;  %v1038_v44 = vrot.slane %v3648_v56, 7 }
 0x2fb   : > { %1889 = vperm.xlu1 %2751, %v3283_v49  }
 0x2fc   : > { %v1346_v50 = vadd.f32 %v1330_v23, %v1250_v25  ;;  %v1070_v55 = vsel %vm1058_vm4, %v4441_v29, %v4343_v38  ;;  %v4443_v23 = vrot.slane %v3633_v26, 7  ;;  %v4444_v25 = vrot.slane %v3635_v24, 7 }
 0x2fd   : > { %v3674_v38 = vmul.f32 %v3383_v48, %v1070_v55 }
 0x2fe   : > { %v1490_v35 = vpop.permute.xlu1 %1489  ;;  %v1442_v36 = vadd.f32 %v1426_v63, %v1346_v50  ;;  %v3661_v49 = vpop.permute.xlu0 %1401  ;;  %v1075_v29 = vsel %vm1058_vm4, %v4444_v25, %v4443_v23  ;;  %v1059_v63 = vsel %vm1058_vm4, %v1038_v44, %v1048_v58  ;;  %v1100_v25 = vrot.slane %v3631_v39, 1 }
 0x2ff   : > { %4442 = vst [vmem:[#allocation64_spill] sm:$0xff] %v3661_v49  ;;  %v1522_v17 = vmul.f32 %v1490_v35, %v3497_v3  ;;  %2753 = vset.pattern.permute.xlu1 %v4396_v52  ;;  %4445 = vst [vmem:[#allocation65_spill] sm:$0xff] %v3674_v38  ;;  %v3681_v52 = vld [vmem:[#allocation2 + $0x70] sm:$0xff]  ;;  %v3683_v49 = vld [vmem:[#allocation2 + $0x78] sm:$0xff]  ;;  %v3687_v23 = vmul.f32 %v3383_v48, %v1075_v29  ;;  %v1322_v55 = vmul.f32 %v3169_v8, %v3674_v38 }
 0x300   : > { %1305 = vperm.xlu1 %2753, %v3314_v37   ;;  %v1321_v35 = vmul.f32 %v3316_v42, %v1059_v63  ;;  %v1242_v29 = vmul.f32 %v3160_v6, %v3470_v14  ;;  %v1418_v8 = vmul.f32 %v3177_v10, %v3631_v39  ;;  %v4448_v38 = vrot.slane %v3648_v56, 1 }
 0x301   : > { %v1538_v3 = vadd.f32 %v1522_v17, %v1442_v36  ;;  %4446 = vst [vmem:[#allocation66_spill] sm:$0xff] %v3687_v23  ;;  %v1045_v36 = vrot.slane %v3681_v52, 7  ;;  %v1055_v17 = vrot.slane %v3683_v49, 7  ;;  %v3718_v10 = vsel %vm1013_vm6, 1.0, %v4391_v2 }
 0x302   : > { %v1338_v63 = vadd.f32 %v1322_v55, %v1242_v29  ;;  %v1610_v2 = vmul.f32 %v3196_v16, %v3503_v40  ;;  %v1706_v29 = vmul.f32 %v3204_v18, %v3536_v41  ;;  %v4453_v16 = vrot.slane %v3454_v57, 1 }
 0x303   : > { %v1586_v0 = vpop.permute.xlu1 %1585  ;;  %v3692_v50 = vpop.permute.xlu0 %1785 }
 0x304   : > { %4447 = vst [vmem:[#allocation67_spill] sm:$0xff] %v3692_v50  ;;  %v1618_v12 = vmul.f32 %v1586_v0, %v3687_v23  ;;  %2755 = vset.pattern.permute.xlu1 %v4403_v19  ;;  %v4449_v50 = vrot.slane %v3650_v61, 1  ;;  %v3712_v19 = vsel %vm1119_vm5, %v1100_v25, %v1110_v45  ;;  %v1241_v0 = vmul.f32 %v3230_v27, %v3628_v43 }
 0x305   : > { %1497 = vperm.xlu1 %2755, %v3314_v37   ;;  %v1514_v23 = vmul.f32 %v3185_v13, %v3712_v19  ;;  %v3727_v27 = vsel %vm1058_vm4, %v1045_v36, %v1055_v17  ;;  %v1417_v13 = vmul.f32 %v3241_v31, %v3650_v61 }
 0x306   : > { %v1130_v42 = vsel %vm1119_vm5, %v4449_v50, %v4448_v38  ;;  %v1634_v6 = vadd.f32 %v1618_v12, %v1538_v3  ;;  %v1105_v38 = vrot.slane %v3633_v26, 1  ;;  %v1337_v50 = vadd.f32 %v1321_v35, %v1241_v0  ;;  %4450 = vst [vmem:[#allocation68_spill] sm:$0xff] %v3727_v27 }
 0x307   : > { %v1141_v56 = vmul.f32 %v3718_v10, %v1130_v42  ;;  %v1434_v3 = vadd.f32 %v1418_v8, %v1338_v63  ;;  %v1076_v35 = vsel %vm1058_vm4, %v1055_v17, %v1045_v36  ;;  %v4452_v8 = vrot.slane %v3470_v14, 1 }
 0x308   : > { %v1682_v22 = vpop.permute.xlu1 %1681  ;;  %v1318_v12 = vpop.permute.xlu0 %1317  ;;  %v1069_v0 = vsel %vm1058_vm4, %v1048_v58, %v1038_v44  ;;  %v1433_v31 = vadd.f32 %v1417_v13, %v1337_v50  ;;  %v3757_v18 = vsel %vm1119_vm5, %v1105_v38, %v1115_v15  ;;  %v1802_v36 = vmul.f32 %v3212_v20, %v3386_v54 }
 0x309   : > { %v3732_v60 = vmul.f32 %v1318_v12, %v3727_v27  ;;  %2756 = vset.pattern.permute.xlu1 %v4414_v30  ;;  %v1530_v55 = vadd.f32 %v1514_v23, %v1434_v3  ;;  %v1132_v42 = vsel %vm1119_vm5, %v4453_v16, %v4452_v8  ;;  %v1513_v63 = vmul.f32 %v3326_v51, %v1141_v56 }
 0x30a   : > { %1593 = vperm.xlu1 %2756, %v3314_v37   ;;  %4454 = vst [vmem:[#allocation70_spill] sm:$0xff] %v3757_v18  ;;  %v1714_v17 = vmul.f32 %v1682_v22, %v3757_v18  ;;  %v3763_v12 = vmul.f32 %v3383_v48, %v1076_v35  ;;  %v4457_v51 = vrot.slane %v3628_v43, 7  ;;  %v4458_v56 = vrot.slane %v3631_v39, 7  ;;  %v4510_v18 = vld [vmem:[#allocation43_spill] sm:$0xff] }
 0x30b   : > { %4451 = vst [vmem:[#allocation69_spill] sm:$0xff] %v3732_v60  ;;  %v1626_v23 = vadd.f32 %v1610_v2, %v1530_v55  ;;  %v3774_v3 = vmul.f32 %v3718_v10, %v1132_v42  ;;  %v1131_v20 = vsel %vm1119_vm5, %v1110_v45, %v1100_v25  ;;  %v1079_v54 = vmul.f32 %v3383_v48, %v1069_v0 }
 0x30c   : > { %4455 = vst [vmem:[#allocation71_spill] sm:$0xff] %v3763_v12  ;;  %v1060_v50 = vsel %vm1058_vm4, %v4458_v56, %v4457_v51  ;;  %v1898_v2 = vmul.f32 %v3220_v1, %v3343_v53  ;;  %v4459_v35 = vrot.slane %v3454_v57, 7  ;;  %v4460_v55 = vrot.slane %v3470_v14, 7 }
 0x30d   : > { %v1778_v58 = vpop.permute.xlu1 %1777  ;;  %v3765_v44 = vpop.permute.xlu0 %1797  ;;  %v1722_v22 = vadd.f32 %v1706_v29, %v1626_v23  ;;  %v1529_v45 = vadd.f32 %v1513_v63, %v1433_v31  ;;  %v4356_v25 = vrot.slane %v3681_v52, 1  ;;  %v4355_v29 = vrot.slane %v3683_v49, 1 }
 0x30e   : > { %4456 = vst [vmem:[#allocation72_spill] sm:$0xff] %v3765_v44  ;;  %2757 = vset.pattern.permute.xlu1 %v4388_v46  ;;  %v1810_v13 = vmul.f32 %v1778_v58, %v3763_v12  ;;  %v3790_v8 = vsel %vm1058_vm4, %v4460_v55, %v4459_v35  ;;  %v3795_v1 = vmul.f32 %v3718_v10, %v1131_v20  ;;  %v4461_v42 = vrot.slane %v3374_v59, 1 }
 0x30f   : > { %1689 = vperm.xlu1 %2757, %v3314_v37   ;;  %v1818_v16 = vadd.f32 %v1802_v36, %v1722_v22  ;;  %v4462_v0 = vrot.slane %v3376_v32, 1  ;;  %v1730_v58 = vadd.f32 %v1714_v17, %v1634_v6  ;;  %v1609_v51 = vmul.f32 %v3249_v34, %v1060_v50 }
 0x310   : > { %v4463_v31 = vrot.slane %v3345_v4, 7  ;;  %v4464_v63 = vrot.slane %v3343_v53, 7  ;;  %v4465_v56 = vrot.slane %v3343_v53, 1  ;;  %v4466_v20 = vrot.slane %v3345_v4, 1 }
 0x311   : > { %v1134_v23 = vsel %vm1119_vm5, %v4462_v0, %v4461_v42  ;;  %v4467_v35 = vrot.slane %v3376_v32, 7  ;;  %v4468_v6 = vrot.slane %v3374_v59, 7  ;;  %v1320_v42 = vmul.f32 %v3179_v11, %v1079_v54 }
 0x312   : > { %v3810_v36 = vsel %vm1058_vm4, %v4464_v63, %v4463_v31  ;;  %v1133_v22 = vsel %vm1119_vm5, %v4466_v20, %v4465_v56  ;;  %v1874_v17 = vpop.permute.xlu1 %1873  ;;  %v3826_v55 = vpop.permute.xlu0 %1309  ;;  %v1914_v0 = vadd.f32 %v1898_v2, %v1818_v16  ;;  %v1826_v53 = vadd.f32 %v1810_v13, %v1730_v58 }
 0x313   : > { %v3824_v34 = vsel %vm1058_vm4, %v4468_v6, %v4467_v35  ;;  %4469 = vst [vmem:[#allocation73_spill] sm:$0xff] %v3826_v55  ;;  %v1906_v31 = vmul.f32 %v1874_v17, %v3681_v52  ;;  %2759 = vset.pattern.permute.xlu1 %v4395_v21  ;;  %v1625_v63 = vadd.f32 %v1609_v51, %v1529_v45  ;;  %v4471_v11 = vrot.slane %v3422_v33, 1  ;;  %v4473_v45 = vld [vmem:[#allocation36_spill] sm:$0xff] }
 0x314   : > { %v1705_v56 = vmul.f32 %v3335_v28, %v3795_v1  ;;  %v3839_v20 = vsel %vm1119_vm5, %v4356_v25, %v4355_v29  ;;  %v4472_v54 = vrot.slane %v3424_v47, 1  ;;  %1881 = vperm.xlu1 %2759, %v3314_v37   ;;  %v1994_v28 = vmul.f32 %v3158_v5, %v3420_v7  ;;  %v4486_v25 = vld [vmem:[#allocation12_spill] sm:$0xff] }
 0x315   : > { %4470 = vst [vmem:[#allocation74_spill] sm:$0xff] %v3839_v20  ;;  %v1240_v13 = vmul.f32 %v3171_v9, %v3631_v39  ;;  %v2002_v16 = vmul.f32 %v4473_v45, %v3839_v20  ;;  %v1922_v58 = vadd.f32 %v1906_v31, %v1826_v53  ;;  %v3855_v51 = vmul.f32 %v3718_v10, %v1133_v22 }
 0x316   : > { %v1135_v2 = vsel %vm1119_vm5, %v4472_v54, %v4471_v11  ;;  %v4474_v35 = vrot.slane %v3424_v47, 7  ;;  %v4475_v6 = vrot.slane %v3422_v33, 7  ;;  %v3866_v5 = vmul.f32 %v3718_v10, %v1134_v23  ;;  %v3886_v23 = vld [vmem:[%s4296_s7] ss:$0 sm:$0xff]  ;;  %v4478_v11 = vld [vmem:[#allocation13_spill] sm:$0xff] }
 0x317   : > { %v3874_v9 = vsel %vm1119_vm5, %v1115_v15, %v1105_v38  ;;  %v1336_v7 = vadd.f32 %v1320_v42, %v1240_v13  ;;  %v2010_v39 = vadd.f32 %v1994_v28, %v1914_v0  ;;  %v3877_v22 = vmul.f32 %v3718_v10, %v1135_v2  ;;  %v1290_v53 = vpop.permute.xlu1 %1289  ;;  %v3881_v31 = vpop.permute.xlu0 %1977  ;;  %v4479_v38 = vld [vmem:[#allocation37_spill] sm:$0xff]  ;;  %v4482_v13 = vld [vmem:[#allocation3_spill] sm:$0xff] }
 0x318   : > { %v3863_v37 = vsel %vm1058_vm4, %v4475_v6, %v4474_v35  ;;  %v3879_v17 = vadd.f32 %v2002_v16, %v1922_v58  ;;  %4477 = vst [vmem:[#allocation75_spill] sm:$0xff] %v3881_v31  ;;  %v1243_v54 = vmul.f32 %v4478_v11, %v3454_v57  ;;  %v1721_v15 = vadd.f32 %v1705_v56, %v1625_v63  ;;  %v4480_v0 = vld [vmem:[#allocation29_spill] sm:$0xff]  ;;  %v4484_v35 = vld [vmem:[#allocation63_spill] sm:$0xff]  ;;  %v4485_v6 = vld [vmem:[#allocation8_spill] sm:$0xff] }
 0x319   : > { %v1248_v42 = vmul.f32 %v4479_v38, %v3422_v33  ;;  %v1328_v2 = vmul.f32 %v1290_v53, %v4480_v0  ;;  %v4481_v28 = vmov 4   ;;  %v1704_v45 = vmul.f32 %v4482_v13, %v3712_v19  ;;  %v4483_v16 = vld [vmem:[#allocation5_spill] sm:$0xff]  ;;  %v4487_v11 = vld [vmem:[#allocation20_spill] sm:$0xff]  ;;  %v4488_v63 = vld [vmem:[#allocation14_spill] sm:$0xff] }
 0x31a   : > { %4476 = vst [vmem:[#allocation36_spill] sm:$0xff] %v3879_v17  ;;  %2760 = vset.pattern.permute.xlu1 %v4481_v28  ;;  %v1323_v58 = vmul.f32 %v4483_v16, %v1060_v50  ;;  %v1416_v29 = vmul.f32 %v4485_v6, %v4484_v35  ;;  %v1801_v55 = vmul.f32 %v4486_v25, %v3790_v8  ;;  %v4489_v56 = vld [vmem:[#allocation38_spill] sm:$0xff]  ;;  %v4490_v0 = vrot.slane %v3650_v61, 1  ;;  %v4492_v13 = vld [vmem:[#allocation4_spill] sm:$0xff] }
 0x31b   : > { %1237 = vperm.xlu1 %2760, %v4487_v11   ;;  %v1419_v33 = vmul.f32 %v4488_v63, %v3628_v43  ;;  %v1424_v53 = vmul.f32 %v4489_v56, %v3374_v59  ;;  %v1344_v38 = vadd.f32 %v1328_v2, %v1248_v42  ;;  %v4491_v19 = vrot.slane %v4484_v35, 1  ;;  %v4493_v25 = vld [vmem:[#allocation6_spill] sm:$0xff]  ;;  %v4494_v43 = vld [vmem:[#allocation7_spill] sm:$0xff]  ;;  %v4495_v2 = vld [vmem:[#allocation21_spill] sm:$0xff] }
 0x31c   : > { %v1896_v16 = vmul.f32 %v4492_v13, %v3470_v14  ;;  %v1707_v6 = vmul.f32 %v4493_v25, %v3774_v3  ;;  %v3917_v44 = vmul.f32 %v3886_v23, %v2010_v39  ;;  %v3921_v63 = vmul.f32 %v4494_v43, %v3345_v4  ;;  %v1482_v56 = vpop.permute.xlu1 %1481  ;;  %v4496_v14 = vld [vmem:[#allocation65_spill] sm:$0xff]  ;;  %v4498_v25 = vld [vmem:[#allocation31_spill] sm:$0xff]  ;;  %v4500_v43 = vld [vmem:[#allocation10_spill] sm:$0xff] }
 0x31d   : > { %v1120_v50 = vsel %vm1119_vm5, %v4491_v19, %v4490_v0  ;;  %v1339_v42 = vadd.f32 %v1323_v58, %v1243_v54  ;;  %v1817_v61 = vadd.f32 %v1801_v55, %v1721_v15  ;;  %v1897_v35 = vmul.f32 %v4495_v2, %v3454_v57  ;;  %v1450_v19 = vpop.permute.xlu0 %1449  ;;  %v4497_v13 = vld [vmem:[#allocation9_spill] sm:$0xff]  ;;  %v4501_v55 = vld [vmem:[#allocation11_spill] sm:$0xff]  ;;  %v4502_v58 = vld [vmem:[#allocation56_spill] sm:$0xff] }
 0x31e   : > { %v1440_v0 = vadd.f32 %v1424_v53, %v1344_v38  ;;  %v1432_v60 = vadd.f32 %v1416_v29, %v1336_v7  ;;  %v1608_v31 = vmul.f32 %v4497_v13, %v4496_v14  ;;  %v1520_v20 = vmul.f32 %v1482_v56, %v4498_v25  ;;  %v4503_v29 = vld [vmem:[#allocation23_spill] sm:$0xff]  ;;  %v4504_v38 = vld [vmem:[#allocation32_spill] sm:$0xff]  ;;  %v4505_v2 = vld [vmem:[#allocation41_spill] sm:$0xff] }
 0x31f   : > { %v1512_v39 = vmul.f32 %v1450_v19, %v1120_v50  ;;  %v4499_v48 = vmov 1   ;;  %v1800_v12 = vmul.f32 %v4500_v43, %v3503_v40  ;;  %v1992_v54 = vmul.f32 %v4501_v55, %v3536_v41  ;;  %v4506_v14 = vld [vmem:[#allocation16_spill] sm:$0xff] }
 0x320   : > { %2762 = vset.pattern.permute.xlu1 %v4499_v48  ;;  %v1435_v15 = vadd.f32 %v1419_v33, %v1339_v42  ;;  %v1245_v53 = vmul.f32 %v4502_v58, %v3345_v4  ;;  %v1993_v7 = vmul.f32 %v4503_v29, %v3774_v3  ;;  %v1616_v50 = vmul.f32 %v4505_v2, %v4504_v38  ;;  %v4507_v41 = vld [vmem:[#allocation24_spill] sm:$0xff]  ;;  %v4508_v42 = vld [vmem:[#allocation58_spill] sm:$0xff] }
 0x321   : > { %1413 = vperm.xlu1 %2762, %v4487_v11   ;;  %v1536_v56 = vadd.f32 %v1520_v20, %v1440_v0  ;;  %v1528_v19 = vadd.f32 %v1512_v39, %v1432_v60  ;;  %v1611_v40 = vmul.f32 %v4506_v14, %v3790_v8  ;;  %v1913_v13 = vadd.f32 %v1897_v35, %v1817_v61  ;;  %v1462_v55 = vpop.permute.xlu0 %1461  ;;  %v4509_v58 = vld [vmem:[#allocation34_spill] sm:$0xff]  ;;  %v1770_v20 = vpop.permute.xlu1 %1769  ;;  %v4511_v60 = vld [vmem:[#allocation19_spill] sm:$0xff]  ;;  %v4512_v61 = vld [vmem:[#allocation44_spill] sm:$0xff] }
 0x322   : > { %v1325_v33 = vmul.f32 %v4507_v41, %v3790_v8  ;;  %v1421_v43 = vmul.f32 %v4508_v42, %v3454_v57  ;;  %v1712_v17 = vmul.f32 %v4510_v18, %v4509_v58  ;;  %v1515_v38 = vmul.f32 %v1462_v55, %v3795_v1  ;;  %v4513_v8 = vld [vmem:[#allocation66_spill] sm:$0xff]  ;;  %v4514_v1 = vld [vmem:[#allocation39_spill] sm:$0xff] }
 0x323   : > { %v1632_v29 = vadd.f32 %v1616_v50, %v1536_v56  ;;  %v1624_v27 = vadd.f32 %v1608_v31, %v1528_v19  ;;  %v1327_v0 = vmul.f32 %v4511_v60, %v3810_v36  ;;  %v1247_v35 = vmul.f32 %v4512_v61, %v3376_v32  ;;  %v4515_v50 = vld [vmem:[#allocation45_spill] sm:$0xff]  ;;  %v4516_v19 = vld [vmem:[#allocation46_spill] sm:$0xff]  ;;  %v4521_v61 = vld [vmem:[#allocation40_spill] sm:$0xff] }
 0x324   : > { %v1341_v39 = vadd.f32 %v1325_v33, %v1245_v53  ;;  %v1808_v2 = vmul.f32 %v1770_v20, %v4513_v8  ;;  %v2009_v57 = vadd.f32 %v1993_v7, %v1913_v13  ;;  %v1531_v41 = vadd.f32 %v1515_v38, %v1435_v15  ;;  %v4518_v15 = vld [vmem:[#allocation27_spill] sm:$0xff] }
 0x325   : > { %2763 = vset.pattern.permute.xlu1 %v4414_v30  ;;  %v1720_v14 = vadd.f32 %v1704_v45, %v1624_v27  ;;  %v1728_v18 = vadd.f32 %v1712_v17, %v1632_v29  ;;  %v1900_v31 = vmul.f32 %v4514_v1, %v3374_v59  ;;  %v1904_v56 = vmul.f32 %v4515_v50, %v3633_v26  ;;  %v1470_v33 = vpop.permute.xlu0 %1469  ;;  %v4517_v17 = vld [vmem:[#allocation17_spill] sm:$0xff]  ;;  %v4519_v59 = vld [vmem:[#allocation42_spill] sm:$0xff]  ;;  %v4524_v1 = vld [vmem:[#allocation60_spill] sm:$0xff] }
 0x326   : > { %1605 = vperm.xlu1 %2763, %v4487_v11   ;;  %v1423_v42 = vmul.f32 %v4516_v19, %v3345_v4  ;;  %v1437_v53 = vadd.f32 %v1421_v43, %v1341_v39  ;;  %v1627_v58 = vadd.f32 %v1611_v40, %v1531_v41  ;;  %v1517_v27 = vmul.f32 %v1470_v33, %v3774_v3  ;;  %v3969_v38 = vpop.permute.xlu1 %1961  ;;  %v4520_v40 = vld [vmem:[#allocation28_spill] sm:$0xff] }
 0x327   : > { %v1816_v55 = vadd.f32 %v1800_v12, %v1720_v14  ;;  %v1824_v30 = vadd.f32 %v1808_v2, %v1728_v18  ;;  %v1803_v45 = vmul.f32 %v4517_v17, %v3810_v36  ;;  %v1613_v7 = vmul.f32 %v4518_v15, %v3810_v36  ;;  %v4522_v2 = vld [vmem:[#allocation18_spill] sm:$0xff]  ;;  %v4523_v41 = vld [vmem:[#allocation48_spill] sm:$0xff] }
 0x328   : > { %v1996_v13 = vmul.f32 %v4519_v59, %v4498_v25  ;;  %v1343_v29 = vadd.f32 %v1327_v0, %v1247_v35  ;;  %v1723_v43 = vadd.f32 %v1707_v6, %v1627_v58  ;;  %v1533_v20 = vadd.f32 %v1517_v27, %v1437_v53  ;;  %v4526_v58 = vld [vmem:[#allocation50_spill] sm:$0xff] }
 0x329   : > { %v1912_v4 = vadd.f32 %v1896_v16, %v1816_v55  ;;  %v3971_v12 = vadd.f32 %v1904_v56, %v1824_v30  ;;  %v2032_v3 = vmul.f32 %v3886_v23, %v2009_v57  ;;  %v1709_v60 = vmul.f32 %v4520_v40, %v3855_v51  ;;  %v1478_v25 = vpop.permute.xlu0 %1477  ;;  %v3982_v16 = vld [vmem:[%s4297_s8] ss:$0 sm:$0xff] }
 0x32a   : > { %2764 = vset.pattern.permute.xlu1 %v4388_v46  ;;  %v1916_v36 = vadd.f32 %v1900_v31, %v4521_v61  ;;  %v1439_v39 = vadd.f32 %v1423_v42, %v1343_v29  ;;  %v1819_v0 = vadd.f32 %v1803_v45, %v1723_v43  ;;  %v1629_v35 = vadd.f32 %v1613_v7, %v1533_v20  ;;  %v4527_v7 = vld [vmem:[#allocation26_spill] sm:$0xff] }
 0x32b   : > { %1701 = vperm.xlu1 %2764, %v4487_v11   ;;  %v2008_v6 = vadd.f32 %v1992_v54, %v1912_v4  ;;  %v1519_v46 = vmul.f32 %v1478_v25, %v3855_v51  ;;  %v1995_v57 = vmul.f32 %v4522_v2, %v3855_v51  ;;  %v1615_v18 = vmul.f32 %v4523_v41, %v3824_v34  ;;  %v1218_v42 = vpop.permute.xlu1 %1217  ;;  %v4525_v51 = vld [vmem:[#allocation30_spill] sm:$0xff]  ;;  %v4532_v25 = vld [vmem:[#allocation52_spill] sm:$0xff] }
 0x32c   : > { %v2012_v14 = vadd.f32 %v1996_v13, %v1916_v36  ;;  %v1805_v31 = vmul.f32 %v4524_v1, %v3824_v34  ;;  %v1915_v50 = vadd.f32 %v3921_v63, %v1819_v0  ;;  %v1725_v56 = vadd.f32 %v1709_v60, %v1629_v35  ;;  %v4529_v13 = vld [vmem:[#allocation33_spill] sm:$0xff]  ;;  %v4531_v36 = vld [vmem:[#allocation35_spill] sm:$0xff]  ;;  %v4533_v1 = vld [vmem:[#allocation54_spill] sm:$0xff] }
 0x32d   : > { %v1535_v19 = vadd.f32 %v1519_v46, %v1439_v39  ;;  %v2031_v54 = vmul.f32 %v3886_v23, %v2008_v6  ;;  %v2056_v53 = vadd.f32 %v3982_v16, %v3917_v44  ;;  %v2055_v33 = vadd.f32 %v3982_v16, %v2032_v3  ;;  %v4001_v27 = vpop.permute.xlu0 %1485  ;;  %v4528_v44 = vld [vmem:[#allocation22_spill] sm:$0xff] }
 0x32e   : > { %v1901_v55 = vmul.f32 %v4525_v51, %v3376_v32  ;;  %v1711_v30 = vmul.f32 %v4526_v58, %v3866_v5  ;;  %v2011_v63 = vadd.f32 %v1995_v57, %v1915_v50  ;;  %v1821_v17 = vadd.f32 %v1805_v31, %v1725_v56 }
 0x32f   : > { %2766 = vset.pattern.permute.xlu1 %v4481_v28  ;;  %v1631_v45 = vadd.f32 %v1615_v18, %v1535_v19  ;;  %v1251_v15 = vmul.f32 %v1218_v42, %v3635_v24  ;;  %v1807_v59 = vmul.f32 %v4528_v44, %v3863_v37  ;;  %v1997_v29 = vmul.f32 %v4529_v13, %v3866_v5  ;;  %v4530_v28 = vld [vmem:[#allocation47_spill] sm:$0xff] }
 0x330   : > { %1227 = vperm.xlu1 %2766, %v4527_v7   ;;  %v2035_v4 = vmul.f32 %v3886_v23, %v2012_v14  ;;  %v2054_v43 = vadd.f32 %v3982_v16, %v2031_v54  ;;  %v1331_v20 = vmul.f32 %v4530_v28, %v3863_v37  ;;  %v2034_v3 = vmul.f32 %v3886_v23, %v2011_v63  ;;  %v1398_v0 = vpop.permute.xlu1 %1397  ;;  %v4536_v28 = vld [vmem:[#allocation49_spill] sm:$0xff] }
 0x331   : > { %v1917_v40 = vadd.f32 %v1901_v55, %v1821_v17  ;;  %v1727_v60 = vadd.f32 %v1711_v30, %v1631_v45  ;;  %v2071_v61 = vmax.f32 %v2055_v33, 0.0  ;;  %v2037_v39 = vmul.f32 %v3886_v23, %v4531_v36  ;;  %v1494_v35 = vpop.permute.xlu0 %1493 }
 0x332   : > { %v1903_v6 = vmul.f32 %v4532_v25, %v3424_v47  ;;  %v2070_v46 = vmax.f32 %v2054_v43, 0.0  ;;  %v1347_v14 = vadd.f32 %v1331_v20, %v1251_v15  ;;  %v1427_v41 = vmul.f32 %v1398_v0, %v3424_v47 }
 0x333   : > { %v2013_v2 = vadd.f32 %v1997_v29, %v1917_v40  ;;  %v1823_v57 = vadd.f32 %v1807_v59, %v1727_v60  ;;  %v2058_v18 = vadd.f32 %v3982_v16, %v2035_v4  ;;  %v1999_v31 = vmul.f32 %v4533_v1, %v3877_v22 }
 0x334   : > { %2768 = vset.pattern.permute.xlu1 %v4499_v48  ;;  %v2086_v50 = vpack.c.bf16 %v2071_v61, %v2070_v46  ;;  %v2057_v56 = vadd.f32 %v3982_v16, %v2034_v3  ;;  %v1443_v42 = vadd.f32 %v1427_v41, %v1347_v14  ;;  %v1523_v54 = vmul.f32 %v1494_v35, %v3877_v22  ;;  %v4541_v46 = vld [vmem:[#allocation51_spill] sm:$0xff] }
 0x335   : > { %1405 = vperm.xlu1 %2768, %v4527_v7   ;;  %v1919_v19 = vadd.f32 %v1903_v6, %v1823_v57  ;;  %v2036_v33 = vmul.f32 %v3886_v23, %v2013_v2  ;;  %v2072_v51 = vmax.f32 %v2056_v53, 0.0  ;;  %v4534_v55 = vrot.slane %v3635_v24, 7  ;;  %v1590_v45 = vpop.permute.xlu1 %1589 }
 0x336   : > { %2569 = vmatprep.mubr.msk.bf16.mxu0 %vm588_vm1, %v2086_v50  ;;  %v2073_v48 = vmax.f32 %v2057_v56, 0.0  ;;  %v4535_v58 = vrot.slane %v3633_v26, 7  ;;  %v1539_v17 = vadd.f32 %v1523_v54, %v1443_v42  ;;  %v4039_v44 = vmul.f32 %v3718_v10, %v3874_v9 }
 0x337   : > { %v2015_v63 = vadd.f32 %v1999_v31, %v1919_v19  ;;  %v2059_v15 = vadd.f32 %v3982_v16, %v2036_v33  ;;  %v2060_v13 = vadd.f32 %v3982_v16, %v2037_v39  ;;  %v2074_v29 = vmax.f32 %v2058_v18, 0.0  ;;  %v4539_v39 = vld [vmem:[#allocation68_spill] sm:$0xff] }
 0x338   : > { %v4034_v30 = vsel %vm1058_vm4, %v4535_v58, %v4534_v55  ;;  %v2087_v59 = vpack.c.bf16 %v2073_v48, %v2072_v51  ;;  %v1715_v20 = vmul.f32 %v4536_v28, %v4039_v44  ;;  %v4537_v61 = vrot.slane %v3681_v52, 1  ;;  %v4542_v31 = vld [vmem:[#allocation36_spill] sm:$0xff]  ;;  %v4544_v48 = vld [vmem:[#allocation15_spill] sm:$0xff] }
 0x339   : > { %v1619_v53 = vmul.f32 %v1590_v45, %v4034_v30  ;;  %2769 = vset.pattern.permute.xlu1 %v4395_v21  ;;  %v2075_v4 = vmax.f32 %v2059_v15, 0.0  ;;  %v2038_v43 = vmul.f32 %v3886_v23, %v2015_v63  ;;  %v4538_v36 = vrot.slane %v3683_v49, 1  ;;  %v4545_v63 = vld [vmem:[#allocation53_spill] sm:$0xff] }
 0x33a   : > { %1893 = vperm.xlu1 %2769, %v4487_v11   ;;  %2570 = vmatmul.mubr.msk.bf16.vlgmr.msra.gmra.mxu0 %vm588_vm1, %v2087_v59  ;;  %v1782_v60 = vpop.permute.xlu1 %1781  ;;  %v4540_v6 = vmov 6   ;;  %v2076_v0 = vmax.f32 %v2060_v13, 0.0  ;;  %v1907_v2 = vmul.f32 %v4541_v46, %v3683_v49  ;;  %v2041_v50 = vmul.f32 %v3886_v23, %v4542_v31 }
 0x33b   : > { %v1635_v3 = vadd.f32 %v1619_v53, %v1539_v17  ;;  %v2088_v9 = vpack.c.bf16 %v2075_v4, %v2074_v29  ;;  %v2061_v40 = vadd.f32 %v3982_v16, %v2038_v43  ;;  %v1137_v11 = vsel %vm1119_vm5, %v4538_v36, %v4537_v61 }
 0x33c   : > { %v1811_v25 = vmul.f32 %v1782_v60, %v4539_v39  ;;  %v4063_v41 = vmul.f32 %v3718_v10, %v1137_v11  ;;  %v4543_v19 = vmov 8   ;;  %v2064_v54 = vadd.f32 %v3982_v16, %v2041_v50  ;;  %v4547_v60 = vld [vmem:[#allocation70_spill] sm:$0xff] }
 0x33d   : > { %v1731_v21 = vadd.f32 %v1715_v20, %v1635_v3  ;;  %2573 = vmatprep.mubr.msk.bf16.mxu0 %vm588_vm1, %v2088_v9  ;;  %v2077_v35 = vmax.f32 %v2061_v40, 0.0  ;;  %v1329_v17 = vmul.f32 %v4545_v63, %v3824_v34  ;;  %v1521_v4 = vmul.f32 %v4001_v27, %v3866_v5  ;;  %v4546_v34 = vld [vmem:[#allocation55_spill] sm:$0xff] }
 0x33e   : > { %2774 = vset.pattern.permute.xlu1 %v4540_v6  ;;  %v2080_v45 = vmax.f32 %v2064_v54, 0.0  ;;  %v1809_v40 = vmul.f32 %v4546_v34, %v4034_v30  ;;  %v4555_v34 = vld [vmem:[#allocation64_spill] sm:$0xff] }
 0x33f   : > { %1789 = vperm.xlu1 %2774, %v4527_v7   ;;  %v1827_v57 = vadd.f32 %v1811_v25, %v1731_v21  ;;  %v2089_v14 = vpack.c.bf16 %v2077_v35, %v2076_v0  ;;  %v1974_v18 = vpop.permute.xlu1 %1973  ;;  %v2000_v21 = vmul.f32 %v3969_v38, %v4547_v60  ;;  %v4089_v25 = vld [vmem:[#allocation2 + $0x80] sm:$0xff] }
 0x340   : > { %v2003_v56 = vmul.f32 %v1974_v18, %v4063_v41  ;;  %v1046_v38 = vrot.slane %v4089_v25, 7 }
 0x341   : > { %v1923_v1 = vadd.f32 %v1907_v2, %v1827_v57  ;;  %v2016_v11 = vadd.f32 %v2000_v21, %v3971_v12 }
 0x342   : > { %2574 = vmatmul.mubr.msk.bf16.gmra.mxu0 %vm588_vm1, %v2089_v14  ;;  %v4548_v14 = vld [vmem:[#allocation57_spill] sm:$0xff] }
 0x343   : > { %2776 = vset.pattern.permute.xlu1 %v4543_v19  ;;  %v2019_v42 = vadd.f32 %v2003_v56, %v1923_v1  ;;  %v1254_v18 = vmul.f32 %v4548_v14, %v4089_v25  ;;  %v4549_v1 = vld [vmem:[#allocation71_spill] sm:$0xff] }
 0x344   : > { %1981 = vperm.xlu1 %2776, %v4527_v7   ;;  %v1208_v51 = vpop.permute.xlu1 %1207  ;;  %v4550_v56 = vld [vmem:[#allocation59_spill] sm:$0xff] }
 0x345   : > { %v2042_v33 = vmul.f32 %v3886_v23, %v2019_v42  ;;  %v1249_v58 = vmul.f32 %v1208_v51, %v3424_v47  ;;  %v1430_v19 = vmul.f32 %v4550_v56, %v3681_v52  ;;  %v4557_v14 = vld [vmem:[#allocation75_spill] sm:$0xff] }
 0x347   : > { %v2065_v55 = vadd.f32 %v3982_v16, %v2042_v33  ;;  %v1345_v59 = vadd.f32 %v1329_v17, %v1249_v58  ;;  %v4551_v58 = vld [vmem:[#allocation25_spill] sm:$0xff]  ;;  %v4552_v17 = vld [vmem:[#allocation74_spill] sm:$0xff] }
 0x348   : > { %1985 = vperm.xlu1 %2776, %v4544_v48  }
 0x349   : > { %v2081_v15 = vmax.f32 %v2065_v55, 0.0  ;;  %v1390_v53 = vpop.permute.xlu1 %1389 }
 0x34a   : > { %v1425_v7 = vmul.f32 %v1390_v53, %v3376_v32  ;;  %v4553_v53 = vld [vmem:[#allocation61_spill] sm:$0xff] }
 0x34b   : > { %v2091_v13 = vpack.c.bf16 %v2081_v15, %v2080_v45 }
 0x34c   : > { %v1441_v29 = vadd.f32 %v1425_v7, %v1345_v59 }
 0x34e   : > { %v1582_v43 = vpop.permute.xlu1 %1581  ;;  %v1537_v28 = vadd.f32 %v1521_v4, %v1441_v29 }
 0x34f   : > { %v1617_v20 = vmul.f32 %v1582_v43, %v3863_v37  ;;  %v4091_v37 = vld [vmem:[#allocation2 + $0x88] sm:$0xff] }
 0x350   : > { %v1056_v46 = vrot.slane %v4091_v37, 7 }
 0x351   : > { %v1633_v47 = vadd.f32 %v1617_v20, %v1537_v28 }
 0x352   : > { %v1077_v42 = vsel %vm1058_vm4, %v1056_v46, %v1046_v38 }
 0x353   : > { %v1678_v3 = vpop.permute.xlu1 %1677  ;;  %v1095_v63 = vmul.f32 %v4551_v58, %v1077_v42 }
 0x354   : > { %v1713_v9 = vmul.f32 %v1678_v3, %v3877_v22  ;;  %v2039_v22 = vmul.f32 %v3886_v23, %v2016_v11  ;;  %v4554_v3 = vld [vmem:[#allocation62_spill] sm:$0xff] }
 0x355   : > { %v1622_v59 = vmul.f32 %v4553_v53, %v1095_v63 }
 0x356   : > { %v1729_v32 = vadd.f32 %v1713_v9, %v1633_v47  ;;  %v2062_v2 = vadd.f32 %v3982_v16, %v2039_v22  ;;  %v1252_v47 = vmul.f32 %v4554_v3, %v3681_v52 }
 0x358   : > { %v1870_v61 = vpop.permute.xlu1 %1869  ;;  %v1825_v36 = vadd.f32 %v1809_v40, %v1729_v32  ;;  %v2078_v33 = vmax.f32 %v2062_v2, 0.0  ;;  %v1428_v40 = vmul.f32 %v4555_v34, %v3633_v26 }
 0x359   : > { %v1905_v5 = vmul.f32 %v1870_v61, %v3635_v24 }
 0x35b   : > { %v1921_v6 = vadd.f32 %v1905_v5, %v1825_v36 }
 0x35d   : > { %v1966_v27 = vpop.permute.xlu1 %1965 }
 0x35e   : > { %v2001_v0 = vmul.f32 %v1966_v27, %v4039_v44 }
 0x360   : > { %v2017_v35 = vadd.f32 %v2001_v0, %v1921_v6  ;;  %v4556_v0 = vld [vmem:[#allocation67_spill] sm:$0xff] }
 0x361   : > { %v1812_v52 = vmul.f32 %v4556_v0, %v1095_v63 }
 0x362   : > { %v2040_v12 = vmul.f32 %v3886_v23, %v2017_v35  ;;  %v1314_v57 = vpop.permute.xlu1 %1313  ;;  %v1117_v35 = vrot.slane %v4091_v37, 1 }
 0x363   : > { %v1334_v31 = vmul.f32 %v1314_v57, %v4549_v1 }
 0x364   : > { %v2063_v50 = vadd.f32 %v3982_v16, %v2040_v12 }
 0x365   : > { %v1350_v54 = vadd.f32 %v1334_v31, %v1254_v18 }
 0x366   : > { %v2079_v51 = vmax.f32 %v2063_v50, 0.0 }
 0x367   : > { %v1506_v48 = vpop.permute.xlu1 %1505  ;;  %v1446_v55 = vadd.f32 %v1430_v19, %v1350_v54  ;;  %v1510_v19 = vpop.permute.xlu0 %1509  ;;  %v4558_v54 = vld [vmem:[#allocation69_spill] sm:$0xff] }
 0x368   : > { %v1526_v45 = vmul.f32 %v1506_v48, %v4552_v17  ;;  %v2090_v15 = vpack.c.bf16 %v2079_v51, %v2078_v33  ;;  %v4144_v48 = vld [vmem:[#allocation2 + $0x90] sm:$0xff]  ;;  %v1527_v63 = vmul.f32 %v1510_v19, %v4063_v41 }
 0x369   : > { %v1047_v53 = vrot.slane %v4144_v48, 7 }
 0x36a   : > { %v1542_v7 = vadd.f32 %v1526_v45, %v1446_v55  ;;  %2577 = vmatprep.mubr.msk.bf16.mxu0 %vm588_vm1, %v2090_v15  ;;  %v4146_v55 = vld [vmem:[#allocation2 + $0x98] sm:$0xff] }
 0x36b   : > { %2578 = vmatmul.mubr.msk.bf16.gmra.mxu0 %vm588_vm1, %v2091_v13  ;;  %v1502_v3 = vpop.permute.xlu0 %1501 }
 0x36c   : > { %v4116_v29 = vpop.permute.xlu1 %1697  ;;  %v4118_v4 = vadd.f32 %v1622_v59, %v1542_v7  ;;  %v1057_v59 = vrot.slane %v4146_v55, 7  ;;  %v1067_v7 = vsel %vm1058_vm4, %v1046_v38, %v1056_v46  ;;  %v4560_v46 = vld [vmem:[#allocation73_spill] sm:$0xff] }
 0x36e   : > { %v1068_v34 = vsel %vm1058_vm4, %v1047_v53, %v1057_v59 }
 0x371   : > { %v4120_v43 = vpop.permute.xlu1 %1793 }
 0x376   : > { %v4122_v28 = vpop.permute.xlu1 %1889 }
 0x37b   : > { %v1306_v20 = vpop.permute.xlu1 %1305 }
 0x37c   : > { %v1332_v9 = vmul.f32 %v1306_v20, %v4513_v8  ;;  %v1107_v8 = vrot.slane %v4089_v25, 1 }
 0x37e   : > { %v1348_v21 = vadd.f32 %v1332_v9, %v1252_v47  ;;  %v1138_v20 = vsel %vm1119_vm5, %v1117_v35, %v1107_v8 }
 0x37f   : > { %v1157_v9 = vmul.f32 %v3718_v10, %v1138_v20 }
 0x380   : > { %v1498_v32 = vpop.permute.xlu1 %1497  ;;  %v1444_v13 = vadd.f32 %v1428_v40, %v1348_v21 }
 0x381   : > { %v1524_v61 = vmul.f32 %v1498_v32, %v4547_v60  ;;  %v1128_v60 = vsel %vm1119_vm5, %v1107_v8, %v1117_v35  ;;  %v1525_v8 = vmul.f32 %v1502_v3, %v4039_v44  ;;  %v1108_v35 = vrot.slane %v4144_v48, 1 }
 0x382   : > { %v2004_v18 = vmul.f32 %v4557_v14, %v1128_v60 }
 0x383   : > { %v1540_v5 = vadd.f32 %v1524_v61, %v1444_v13  ;;  %v4559_v13 = vld [vmem:[#allocation72_spill] sm:$0xff] }
 0x384   : > { %v1815_v61 = vmul.f32 %v4559_v13, %v1068_v34 }
 0x385   : > { %v1594_v36 = vpop.permute.xlu1 %1593 }
 0x386   : > { %v1620_v11 = vmul.f32 %v1594_v36, %v4549_v1  ;;  %v1598_v36 = vpop.permute.xlu0 %1597 }
 0x388   : > { %v1636_v22 = vadd.f32 %v1620_v11, %v1540_v5 }
 0x38a   : > { %v1690_v27 = vpop.permute.xlu1 %1689 }
 0x38b   : > { %v1716_v6 = vmul.f32 %v1690_v27, %v4552_v17  ;;  %v1333_v27 = vmul.f32 %v4560_v46, %v4034_v30  ;;  %v1078_v30 = vsel %vm1058_vm4, %v1057_v59, %v1047_v53 }
 0x38d   : > { %v1732_v26 = vadd.f32 %v1716_v6, %v1636_v22  ;;  %v1694_v22 = vpop.permute.xlu0 %1693 }
 0x38f   : > { %v1882_v2 = vpop.permute.xlu1 %1881  ;;  %v1828_v12 = vadd.f32 %v1812_v52, %v1732_v26  ;;  %v1118_v26 = vrot.slane %v4146_v55, 1 }
 0x390   : > { %v1908_v57 = vmul.f32 %v1882_v2, %v4089_v25 }
 0x392   : > { %v1924_v1 = vadd.f32 %v1908_v57, %v1828_v12  ;;  %v1621_v12 = vmul.f32 %v1598_v36, %v4539_v39  ;;  %v1886_v57 = vpop.permute.xlu0 %1885 }
 0x394   : > { %v4139_v31 = vadd.f32 %v2004_v18, %v1924_v1  ;;  %v1717_v18 = vmul.f32 %v1694_v22, %v4063_v41 }
 0x396   : > { %v1238_v50 = vpop.permute.xlu1 %1237 }
 0x397   : > { %v1255_v56 = vmul.f32 %v1238_v50, %v4091_v37  ;;  %v1097_v50 = vmul.f32 %v4551_v58, %v1078_v30  ;;  %v1910_v58 = vmul.f32 %v4122_v28, %v4144_v48 }
 0x399   : > { %v1351_v33 = vadd.f32 %v4558_v54, %v1255_v56  ;;  %v1718_v54 = vmul.f32 %v4116_v29, %v1128_v60  ;;  %v1814_v41 = vmul.f32 %v4120_v43, %v1097_v50  ;;  %v2233_v50 = vld [vmem:[%s2951_s24 + $0x38] sm:$0xff] }
 0x39c   : > { %v1414_v42 = vpop.permute.xlu1 %1413 }
 0x39d   : > { %v1431_v51 = vmul.f32 %v1414_v42, %v3683_v49  ;;  %v1990_v42 = vpop.permute.xlu0 %1989 }
 0x39f   : > { %v1447_v17 = vadd.f32 %v1431_v51, %v1351_v33 }
 0x3a1   : > { %v1606_v45 = vpop.permute.xlu1 %1605  ;;  %v1543_v15 = vadd.f32 %v1527_v63, %v1447_v17  ;;  %v1909_v63 = vmul.f32 %v1886_v57, %v4091_v37  ;;  %v1129_v37 = vsel %vm1119_vm5, %v1108_v35, %v1118_v26  ;;  %v2232_v57 = vld [vmem:[%s2951_s24 + $0x30] sm:$0xff] }
 0x3a2   : > { %v1623_v47 = vmul.f32 %v1606_v45, %v1067_v7 }
 0x3a4   : > { %v1639_v21 = vadd.f32 %v1623_v47, %v1543_v15  ;;  %v1734_v15 = vadd.f32 %v1718_v54, %v4118_v4 }
 0x3a6   : > { %v1702_v40 = vpop.permute.xlu1 %1701  ;;  %v1830_v60 = vadd.f32 %v1814_v41, %v1734_v15  ;;  %v2236_v41 = vld [vmem:[%s2951_s24 + $0x50] sm:$0xff]  ;;  %v2234_v15 = vld [vmem:[%s2951_s24 + $0x40] sm:$0xff] }
 0x3a7   : > { %v1719_v32 = vmul.f32 %v1702_v40, %v1157_v9 }
 0x3a8   : > { %v1926_v20 = vadd.f32 %v1910_v58, %v1830_v60 }
 0x3a9   : > { %v1735_v25 = vadd.f32 %v1719_v32, %v1639_v21 }
 0x3ab   : > { %v1228_v11 = vpop.permute.xlu1 %1227  ;;  %v1831_v5 = vadd.f32 %v1815_v61, %v1735_v25  ;;  %v4201_v25 = vld [vmem:[%s4299_s10] ss:$0 sm:$0xff] }
 0x3ac   : > { %v1253_v38 = vmul.f32 %v1228_v11, %v3683_v49 }
 0x3ae   : > { %v1349_v0 = vadd.f32 %v1333_v27, %v1253_v38  ;;  %v2226_v38 = vld [vmem:[%s2951_s24] sm:$0xff] }
 0x3b0   : > { %v1406_v6 = vpop.permute.xlu1 %1405 }
 0x3b1   : > { %v1429_v52 = vmul.f32 %v1406_v6, %v3635_v24  ;;  %v1139_v24 = vsel %vm1119_vm5, %v1118_v26, %v1108_v35  ;;  %v2229_v6 = vld [vmem:[%s2951_s24 + $0x18] sm:$0xff]  ;;  %v2227_v35 = vld [vmem:[%s2951_s24 + $0x8] sm:$0xff] }
 0x3b2   : > { %v1159_v19 = vmul.f32 %v3718_v10, %v1139_v24  ;;  %v2043_v10 = vmul.f32 %v3886_v23, %v4139_v31 }
 0x3b3   : > { %v1445_v2 = vadd.f32 %v1429_v52, %v1349_v0 }
 0x3b4   : > { %v2007_v45 = vmul.f32 %v1990_v42, %v1159_v19  ;;  %v2066_v3 = vadd.f32 %v3982_v16, %v2043_v10  ;;  %v2231_v42 = vld [vmem:[%s2951_s24 + $0x28] sm:$0xff]  ;;  %v2237_v10 = vld [vmem:[%s2951_s24 + $0x58] sm:$0xff] }
 0x3b5   : > { %v1541_v14 = vadd.f32 %v1525_v8, %v1445_v2  ;;  %v1894_v49 = vpop.permute.xlu1 %1893 }
 0x3b6   : > { %v1911_v44 = vmul.f32 %v1894_v49, %v4146_v55 }
 0x3b7   : > { %v1637_v1 = vadd.f32 %v1621_v12, %v1541_v14 }
 0x3b8   : > { %v1927_v51 = vadd.f32 %v1911_v44, %v1831_v5  ;;  %v2228_v5 = vld [vmem:[%s2951_s24 + $0x10] sm:$0xff] }
 0x3b9   : > { %v1733_v56 = vadd.f32 %v1717_v18, %v1637_v1  ;;  %v2230_v18 = vld [vmem:[%s2951_s24 + $0x20] sm:$0xff] }
 0x3ba   : > { %v1790_v39 = vpop.permute.xlu1 %1789  ;;  %v2023_v59 = vadd.f32 %v2007_v45, %v1927_v51 }
 0x3bb   : > { %v1813_v33 = vmul.f32 %v1790_v39, %v1067_v7 }
 0x3bc   : > { %v2046_v4 = vmul.f32 %v3886_v23, %v2023_v59 }
 0x3bd   : > { %v1829_v17 = vadd.f32 %v1813_v33, %v1733_v56 }
 0x3be   : > { %v2069_v34 = vadd.f32 %v3982_v16, %v2046_v4  ;;  %v2240_v4 = vld [vmem:[%s2951_s24 + $0x70] sm:$0xff] }
 0x3bf   : > { %v1982_v55 = vpop.permute.xlu1 %1981  ;;  %v1925_v53 = vadd.f32 %v1909_v63, %v1829_v17 }
 0x3c0   : > { %v2005_v29 = vmul.f32 %v1982_v55, %v1157_v9  ;;  %v2082_v9 = vmax.f32 %v2066_v3, 0.0  ;;  %v2085_v13 = vmax.f32 %v2069_v34, 0.0 }
 0x3c2   : > { %v2021_v7 = vadd.f32 %v2005_v29, %v1925_v53 }
 0x3c3   : > { %v1986_v43 = vpop.permute.xlu1 %1985 }
 0x3c4   : > { %v2044_v28 = vmul.f32 %v3886_v23, %v2021_v7  ;;  %v2006_v48 = vmul.f32 %v1986_v43, %v1129_v37  ;;  %v2235_v7 = vld [vmem:[%s2951_s24 + $0x48] sm:$0xff] }
 0x3c6   : > { %v2067_v47 = vadd.f32 %v3982_v16, %v2044_v28  ;;  %v2022_v31 = vadd.f32 %v2006_v48, %v1926_v20 }
 0x3c8   : > { %v2083_v40 = vmax.f32 %v2067_v47, 0.0  ;;  %v2045_v62 = vmul.f32 %v3886_v23, %v2022_v31  ;;  %v2238_v47 = vld [vmem:[%s2951_s24 + $0x60] sm:$0xff] }
 0x3ca   : > { %v2068_v21 = vadd.f32 %v3982_v16, %v2045_v62  ;;  %v2092_v32 = vpack.c.bf16 %v2083_v40, %v2082_v9  ;;  %v2241_v40 = vld [vmem:[%s2951_s24 + $0x78] sm:$0xff] }
 0x3cc   : > { %v2084_v61 = vmax.f32 %v2068_v21, 0.0  ;;  %2581 = vmatprep.mubr.msk.bf16.mxu0 %vm588_vm1, %v2092_v32 }
 0x3ce   : > { %v2093_v36 = vpack.c.bf16 %v2085_v13, %v2084_v61  ;;  %v2239_v13 = vld [vmem:[%s2951_s24 + $0x68] sm:$0xff] }
 0x3d0   : > { %2582 = vmatmul.mubr.msk.bf16.gmra.mxu0 %vm588_vm1, %v2093_v36 }
 0x3fa   : > { %v2571_v11 = vpop.f32.mrf.mxu0 }
 0x3fb   : > { %v2172_v23 = vadd.f32 %v2571_v11, %v4201_v25 }
 0x3fc   : > { %v2163_v16 = vpop.f32.mrf.mxu0 }
 0x3fd   : > { %v2244_v46 = vadd.f32 %v2228_v5, %v2172_v23  ;;  %v2164_v27 = vadd.f32 %v4201_v25, %v2163_v16 }
 0x3fe   : > { %v2572_v22 = vpop.f32.mrf.mxu0 }
 0x3ff   : > { %2260 = vst.msk [vmem:[%s4210_s25 + $0x10] sm:$0xff] %vm588_vm1, %v2244_v46  ;;  %v2242_v0 = vadd.f32 %v2226_v38, %v2164_v27  ;;  %v2175_v52 = vadd.f32 %v2572_v22, %v4201_v25 }
 0x400   : > { %v2166_v8 = vpop.f32.mrf.mxu0 }
 0x401   : > { %2258 = vst.msk [vmem:[%s4210_s25] sm:$0xff] %vm588_vm1, %v2242_v0  ;;  %v2245_v26 = vadd.f32 %v2229_v6, %v2175_v52  ;;  %v2167_v2 = vadd.f32 %v4201_v25, %v2166_v8 }
 0x402   : > { %v2575_v12 = vpop.f32.mrf.mxu0 }
 0x403   : > { %2261 = vst.msk [vmem:[%s4210_s25 + $0x18] sm:$0xff] %vm588_vm1, %v2245_v26  ;;  %v2243_v14 = vadd.f32 %v2227_v35, %v2167_v2  ;;  %v2188_v49 = vadd.f32 %v2575_v12, %v4201_v25 }
 0x404   : > { %v2179_v30 = vpop.f32.mrf.mxu0 }
 0x405   : > { %2259 = vst.msk [vmem:[%s4210_s25 + $0x8] sm:$0xff] %vm588_vm1, %v2243_v14  ;;  %v2248_v24 = vadd.f32 %v2232_v57, %v2188_v49  ;;  %v2180_v1 = vadd.f32 %v4201_v25, %v2179_v30 }
 0x406   : > { %v2576_v44 = vpop.f32.mrf.mxu0 }
 0x407   : > { %2264 = vst.msk [vmem:[%s4210_s25 + $0x30] sm:$0xff] %vm588_vm1, %v2248_v24  ;;  %v2246_v56 = vadd.f32 %v2230_v18, %v2180_v1  ;;  %v2191_v19 = vadd.f32 %v2576_v44, %v4201_v25 }
 0x408   : > { %v2182_v39 = vpop.f32.mrf.mxu0 }
 0x409   : > { %2262 = vst.msk [vmem:[%s4210_s25 + $0x20] sm:$0xff] %vm588_vm1, %v2246_v56  ;;  %v2249_v54 = vadd.f32 %v2233_v50, %v2191_v19  ;;  %v2183_v33 = vadd.f32 %v4201_v25, %v2182_v39 }
 0x40b   : > { %2265 = vst.msk [vmem:[%s4210_s25 + $0x38] sm:$0xff] %vm588_vm1, %v2249_v54  ;;  %v2247_v51 = vadd.f32 %v2231_v42, %v2183_v33 }
 0x40d   : > { %2263 = vst.msk [vmem:[%s4210_s25 + $0x28] sm:$0xff] %vm588_vm1, %v2247_v51 }
 0x42b   : > { %v2579_v63 = vpop.f32.mrf.mxu0 }
 0x42c   : > { %v2204_v17 = vadd.f32 %v2579_v63, %v4201_v25 }
 0x42d   : > { %v2195_v45 = vpop.f32.mrf.mxu0 }
 0x42e   : > { %v2252_v58 = vadd.f32 %v2236_v41, %v2204_v17  ;;  %v2196_v55 = vadd.f32 %v4201_v25, %v2195_v45 }
 0x42f   : > { %v2580_v53 = vpop.f32.mrf.mxu0 }
 0x430   : > { %2268 = vst.msk [vmem:[%s4210_s25 + $0x50] sm:$0xff] %vm588_vm1, %v2252_v58  ;;  %v2250_v59 = vadd.f32 %v2234_v15, %v2196_v55  ;;  %v2207_v29 = vadd.f32 %v2580_v53, %v4201_v25 }
 0x431   : > { %v2198_v60 = vpop.f32.mrf.mxu0 }
 0x432   : > { %2266 = vst.msk [vmem:[%s4210_s25 + $0x40] sm:$0xff] %vm588_vm1, %v2250_v59  ;;  %v2253_v20 = vadd.f32 %v2237_v10, %v2207_v29  ;;  %v2199_v37 = vadd.f32 %v4201_v25, %v2198_v60 }
 0x434   : > { %2269 = vst.msk [vmem:[%s4210_s25 + $0x58] sm:$0xff] %vm588_vm1, %v2253_v20  ;;  %v2251_v43 = vadd.f32 %v2235_v7, %v2199_v37 }
 0x436   : > { %2267 = vst.msk [vmem:[%s4210_s25 + $0x48] sm:$0xff] %vm588_vm1, %v2251_v43 }
 0x490   : > { %v2583_v3 = vpop.f32.mrf.mxu0 }
 0x491   : > { %v2220_v28 = vadd.f32 %v2583_v3, %v4201_v25 }
 0x492   : > { %v2211_v48 = vpop.f32.mrf.mxu0 }
 0x493   : > { %v2256_v31 = vadd.f32 %v2240_v4, %v2220_v28  ;;  %v2212_v9 = vadd.f32 %v4201_v25, %v2211_v48 }
 0x494   : > { %v2584_v34 = vpop.f32.mrf.mxu0 }
 0x495   : > { %2272 = vst.msk [vmem:[%s4210_s25 + $0x70] sm:$0xff] %vm588_vm1, %v2256_v31  ;;  %v2254_v62 = vadd.f32 %v2238_v47, %v2212_v9  ;;  %v2223_v21 = vadd.f32 %v2584_v34, %v4201_v25 }
 0x496   : > { %v2214_v32 = vpop.f32.mrf.mxu0 }
 0x497   : > { %2270 = vst.msk [vmem:[%s4210_s25 + $0x60] sm:$0xff] %vm588_vm1, %v2254_v62  ;;  %v2257_v61 = vadd.f32 %v2241_v40, %v2223_v21  ;;  %v2215_v36 = vadd.f32 %v4201_v25, %v2214_v32 }
 0x499   : > { %2273 = vst.msk [vmem:[%s4210_s25 + $0x78] sm:$0xff] %vm588_vm1, %v2257_v61  ;;  %v2255_v11 = vadd.f32 %v2239_v13, %v2215_v36 }
 0x49b   : > { %2271 = vst.msk [vmem:[%s4210_s25 + $0x68] sm:$0xff] %vm588_vm1, %v2255_v11 }
 0x49c PF: > { %s21_s21 = sadd.s32 1, %s2816_s21   ;;  %s4562_s17 = smov %s2808_s19 }
 0x49d   : > { %p18_p12 = scmp.ge.s32.totalorder %s21_s21, 6   ;;  %s4563_s18 = smov %s2812_s20 }
 0x49e   : > { %s4564_s19 = smov %s4567_s22  ;;  %s4565_s20 = smov %s4571_s23 }
 0x49f   :  { %20 = sbr.rel (!%p18_p12) target bundleno = 3 (0x3), region = 102 }

</bundles_post_ra>
